<compile_context>
chip_gen: v7x
topology: tpu7x:2x2x1
jax: 0.10.0
libtpu: 0.0.40
codegen_flags: <defaults>
</compile_context>

<pallas_src>
import functools

import jax
import jax.numpy as jnp
from jax.experimental import pallas as pl
from jax.experimental.pallas import tpu as pltpu


# ----------------------------------------------------------------------------
# Fused stage kernel
#   grid axis r runs over all relation terms of all layers (layer-major).
#   out_ref (resident, f32) is the per-layer accumulator; hist_ref is the
#   in-VMEM feature history (slot t = features entering layer t).
# ----------------------------------------------------------------------------
def _fused_stage_kernel(aidx_ref, hidx_ref, tid_ref, first_ref, last_ref,  # SMEM
                        a_ref, x0_ref, w_ref, b_ref,                       # inputs
                        out_ref,                                           # output
                        hist_ref,                                          # scratch
                        *, l2norm):
    r = pl.program_id(0)
    t = tid_ref[r]

    # Stash the initial node features into history slot 0 on the very first step.
    @pl.when(r == 0)
    def _():
        hist_ref[0] = x0_ref[...]

    # One relation term:  contrib = Ahat_r @ (X_hist[hidx[r]] @ W_r)
    # Both matmuls on the native bf16 MXU path, f32 accumulation; no f32 upcast
    # of the Np x Np adjacency (avoids an N^2 VMEM copy + slow f32 MXU path).
    x_in = hist_ref[hidx_ref[r]]                                   # (Np, Dp) f32, possibly delayed
    xw = jnp.dot(x_in.astype(jnp.bfloat16), w_ref[0],
                 preferred_element_type=jnp.float32)               # (Np, Dp) f32
    contrib = jnp.dot(a_ref[0], xw.astype(jnp.bfloat16),
                      preferred_element_type=jnp.float32)          # (Np, Dp) f32

    # First term of a layer writes the accumulator directly (no zero + reload);
    # subsequent terms accumulate.
    @pl.when(first_ref[r] == 1)
    def _():
        out_ref[...] = contrib

    @pl.when(first_ref[r] == 0)
    def _():
        out_ref[...] += contrib

    # Layer epilogue: folded bias sum + residual + ReLU (+ L2 norm); write next
    # history slot and (on the last layer) the final output.
    @pl.when(last_ref[r] == 1)
    def _():
        h = hist_ref[t] + jnp.maximum(out_ref[...] + b_ref[t], 0.0)
        if l2norm:
            ss = jnp.sum(h * h, axis=-1, keepdims=True)
            h = h * jax.lax.rsqrt(jnp.maximum(ss, 1e-24))          # == h / max(||h||, 1e-12)
        hist_ref[t + 1] = h
        out_ref[...] = h


def rel_delay_stage_fused(plan, *, l2norm=True):
    """Run the whole stage as one pallas_call over the precomputed plan."""
    R = int(plan['aidx'].shape[0])
    Np, Dp = plan['x0'].shape
    T = int(plan['num_layers'])

    # Scoped-VMEM budget: double-buffered A + W blocks, resident x0 / out / bias,
    # the feature-history scratch, plus headroom for compiler internal scratch.
    a_blk = Np * Np * 2                       # bf16 adjacency block
    w_blk = Dp * Dp * 2                       # bf16 weight block
    resident = 2 * (Np * Dp * 4) + (T * Dp * 4) + 2 * (Np * Dp * 4)   # x0, bias, out
    hist_b = (T + 1) * Np * Dp * 4
    vmem_limit = int(min(max(2 * a_blk + 2 * w_blk + resident + hist_b + (4 << 20),
                             16 << 20), 128 << 20))

    out = pl.pallas_call(
        functools.partial(_fused_stage_kernel, l2norm=l2norm),
        out_shape=jax.ShapeDtypeStruct((Np, Dp), jnp.float32),
        grid_spec=pltpu.PrefetchScalarGridSpec(
            num_scalar_prefetch=5,
            grid=(R,),
            in_specs=[
                # Ahat for this term (bf16), picked via data-dependent index map.
                # Consecutive terms with equal aidx skip the re-fetch (see plan reorder).
                pl.BlockSpec((1, Np, Np),
                             lambda r, ai, hi, ti, fi, li: (ai[r], 0, 0)),
                # initial node features, resident
                pl.BlockSpec((Np, Dp), lambda r, ai, hi, ti, fi, li: (0, 0)),
                # per-term bf16 weight block, streamed (tiny DMA, hidden under A)
                pl.BlockSpec((1, Dp, Dp), lambda r, ai, hi, ti, fi, li: (r, 0, 0)),
                # per-layer bias sums, resident in VMEM
                pl.BlockSpec((T, 1, Dp), lambda r, ai, hi, ti, fi, li: (0, 0, 0)),
            ],
            out_specs=pl.BlockSpec((Np, Dp), lambda r, ai, hi, ti, fi, li: (0, 0)),
            scratch_shapes=[pltpu.VMEM((T + 1, Np, Dp), jnp.float32)],  # feature history
        ),
        compiler_params=pltpu.CompilerParams(
            dimension_semantics=("arbitrary",),
            vmem_limit_bytes=vmem_limit),
    )(plan['aidx'], plan['hidx'], plan['tid'], plan['first'], plan['last'],
      plan['A_stack'], plan['x0'], plan['W_stack'], plan['b_layer'])
    return out[:plan['N'], :plan['D']]


# ----------------------------------------------------------------------------
# Glue: GCNConv-style normalized dense adjacency from a masked edge subset
# ----------------------------------------------------------------------------
def gcn_norm_adj(edge_index, mask, num_nodes):
    src, dst = edge_index[0], edge_index[1]
    A = jnp.zeros((num_nodes, num_nodes), jnp.float32)
    A = A.at[dst, src].add(mask.astype(jnp.float32))     # A[dst, src]; duplicates accumulate
    A = A + jnp.eye(num_nodes, dtype=jnp.float32)        # self loops
    deg = jnp.sum(A, axis=1)                             # in-degree incl. self loop
    dinv = jax.lax.rsqrt(deg)
    return A * dinv[:, None] * dinv[None, :]


def _round_up(n, m):
    return ((n + m - 1) // m) * m


# ----------------------------------------------------------------------------
# Host-side (eager) plan construction: unique adjacencies (hoisted out of the
# layer loop), flattened relation-term schedule (reordered for A-block reuse
# across layer boundaries), per-layer bias sums, lane-dense padding.
# ----------------------------------------------------------------------------
def build_stage_plan(x, edge_index, edge_attr, params, *, num_layers, edge_types,
                     nu=1, nu_v2=False):
    N, D = x.shape
    Np = _round_up(N, 128)        # lane-dense adjacency dims (full MXU fill)
    Dp = _round_up(D, 128)        # lane-dense feature dim

    # unique normalized adjacencies (do NOT depend on layer t -> build once)
    A_list, a_index = [], {}
    for e in edge_types:
        mask = edge_attr[:, 1] == int(e)
        a_index[('e', e)] = len(A_list)
        A_list.append(gcn_norm_adj(edge_index, mask, N))
    for k in range(2, num_layers + 1):
        mask = edge_attr[:, 0] == k
        # NOTE: evaluated eagerly on concrete edge_attr (mirrors PyTorch's
        # `A(k).shape[1] > 0`); hop activity is static plan metadata, the
        # pallas_call itself is jit-safe given a fixed plan.
        if bool(jnp.any(mask)):
            a_index[('k', k)] = len(A_list)
            A_list.append(gcn_norm_adj(edge_index, mask, N))
    A_stack_f32 = jnp.pad(jnp.stack(A_list), ((0, 0), (0, Np - N), (0, Np - N)))
    A_stack = A_stack_f32.astype(jnp.bfloat16)   # halve the dominant HBM stream

    # per-layer relation terms: (aidx, hist_slot, W, b)
    layer_terms = []
    for t in range(num_layers):
        terms = []
        for e in edge_types:                       # type-filtered pass, input hist[t]
            W, b = params['W_edge'][f'k=1, t={t}, e={e}']
            terms.append((a_index[('e', e)], t, W, b))
        for k in range(2, t + 2):                  # delayed k-hop pass
            if ('k', k) in a_index:
                delay = max(k - nu, 0)
                if nu_v2:
                    delay = int((k - 1) // nu)
                W, b = params['W_kt'][f'k={k}, t={t}']
                terms.append((a_index[('k', k)], t - delay, W, b))
        layer_terms.append(terms)

    # Reorder terms WITHIN each layer (sum is commutative) so that consecutive
    # grid steps across a layer boundary use the same adjacency block index;
    # Pallas then skips the Np^2 A DMA at every layer boundary.
    prev_last = None
    for t in range(num_layers):
        terms = list(layer_terms[t])
        if prev_last is not None and len(terms) > 1:
            for j, trm in enumerate(terms):
                if trm[0] == prev_last:
                    terms.insert(0, terms.pop(j))
                    break
        front_pinned = prev_last is not None and terms[0][0] == prev_last
        if t + 1 < num_layers and len(terms) > 1:
            nxt = {trm[0] for trm in layer_terms[t + 1]}
            if terms[-1][0] not in nxt:
                lo = 1 if front_pinned else 0
                for j in range(len(terms) - 2, lo - 1, -1):
                    if terms[j][0] in nxt:
                        terms.append(terms.pop(j))
                        break
        prev_last = terms[-1][0]
        layer_terms[t] = terms

    # flattened (layer-major) schedule + padded weights + folded per-layer biases
    aidx, hidx, tid, first, last = [], [], [], [], []
    W_list, b_layers = [], []
    for t in range(num_layers):
        terms = layer_terms[t]
        b_sum = jnp.zeros((D,), jnp.float32)
        for j, (ai, hi, W, b) in enumerate(terms):
            aidx.append(ai)
            hidx.append(hi)
            tid.append(t)
            first.append(1 if j == 0 else 0)
            last.append(1 if j == len(terms) - 1 else 0)
            W_list.append(jnp.pad(W, ((0, Dp - D), (0, Dp - D))))
            b_sum = b_sum + b                      # fold biases: sum_r b_r per layer
        b_layers.append(jnp.pad(b_sum, (0, Dp - D)))

    W_stack_f32 = jnp.stack(W_list)                # [R, Dp, Dp] f32 (reference only)
    return dict(
        aidx=jnp.asarray(aidx, jnp.int32),
        hidx=jnp.asarray(hidx, jnp.int32),
        tid=jnp.asarray(tid, jnp.int32),
        first=jnp.asarray(first, jnp.int32),
        last=jnp.asarray(last, jnp.int32),
        A_stack=A_stack,                           # bf16, used by the kernel
        A_stack_f32=A_stack_f32,                   # f32, precision reference
        x0=jnp.pad(x.astype(jnp.float32), ((0, Np - N), (0, Dp - D))),
        W_stack=W_stack_f32.astype(jnp.bfloat16),  # bf16, used by the kernel
        W_stack_f32=W_stack_f32,
        b_layer=jnp.stack(b_layers)[:, None, :],   # [T, 1, Dp] f32
        N=N, D=D, num_layers=num_layers,
    )


# ----------------------------------------------------------------------------
# Pure-JAX references over the SAME plan (no Pallas)
#   match_kernel_precision=True  -> mirrors the kernel's bf16 MXU arithmetic
#   match_kernel_precision=False -> full f32 (original PyTorch precision)
# ----------------------------------------------------------------------------
def rel_delay_stage_ref(plan, *, l2norm=True, match_kernel_precision=True):
    if match_kernel_precision:
        A, W = plan['A_stack'], plan['W_stack']
    else:
        A, W = plan['A_stack_f32'], plan['W_stack_f32']
    bL = plan['b_layer']
    aidx = [int(v) for v in plan['aidx']]
    hidx = [int(v) for v in plan['hidx']]
    tid = [int(v) for v in plan['tid']]
    first = [int(v) for v in plan['first']]
    last = [int(v) for v in plan['last']]

    hist = [plan['x0']]
    x = plan['x0']
    acc = None
    for r in range(len(aidx)):
        t = tid[r]
        x_in = hist[hidx[r]]
        if match_kernel_precision:
            xw = jnp.dot(x_in.astype(jnp.bfloat16), W[r],
                         preferred_element_type=jnp.float32)
            contrib = jnp.dot(A[aidx[r]], xw.astype(jnp.bfloat16),
                              preferred_element_type=jnp.float32)
        else:
            contrib = A[aidx[r]] @ (x_in @ W[r])
        acc = contrib if first[r] else acc + contrib
        if last[r]:
            h = hist[t] + jnp.maximum(acc + bL[t], 0.0)
            if l2norm:
                nrm = jnp.sqrt(jnp.sum(h * h, axis=-1, keepdims=True))
                h = h / jnp.maximum(nrm, 1e-12)
            hist.append(h)
            x = h
    return x[:plan['N'], :plan['D']]


# ----------------------------------------------------------------------------
# Deterministic parameter init (GNNLayer(dim_in, dim_out) -> weight + bias)
# ----------------------------------------------------------------------------
def init_params(key, dim, num_layers, edge_types):
    params = {'W_edge': {}, 'W_kt': {}}

    def gnn_layer_params(k):
        kw, kb = jax.random.split(k)
        W = jax.random.normal(kw, (dim, dim), jnp.float32) / jnp.sqrt(float(dim))
        b = 0.01 * jax.random.normal(kb, (dim,), jnp.float32)
        return W, b

    n_edge = len(edge_types) * num_layers
    n_kt = sum(len(range(2, t + 2)) for t in range(num_layers))
    keys = jax.random.split(key, n_edge + n_kt)
    i = 0
    for e in edge_types:
        for t in range(num_layers):
            params['W_edge'][f'k=1, t={t}, e={e}'] = gnn_layer_params(keys[i])
            i += 1
    for t in range(num_layers):
        for k in range(2, t + 2):
            params['W_kt'][f'k={k}, t={t}'] = gnn_layer_params(keys[i])
            i += 1
    return params


if __name__ == "__main__":
    # small, module-consistent shapes
    N = 16            # nodes
    D = 32            # dim_in == dim_out (residual requires equal dims)
    E = 48            # edges
    NUM_LAYERS = 3
    EDGE_TYPES = ["0", "1"]   # cfg.edge_types
    NU = 1                    # delay = max(k - nu, 0)
    NU_V2 = False
    L2NORM = True             # cfg.gnn.l2norm

    key = jax.random.PRNGKey(0)
    kx, kei, kk, ke, kp = jax.random.split(key, 5)

    x = jax.random.normal(kx, (N, D), jnp.float32)
    edge_index = jax.random.randint(kei, (2, E), 0, N, dtype=jnp.int32)
    hop_k = jax.random.randint(kk, (E,), 1, 4, dtype=jnp.int32)       # k in {1,2,3}
    etype = jax.random.randint(ke, (E,), 0, len(EDGE_TYPES), dtype=jnp.int32)
    edge_attr = jnp.stack([hop_k, etype], axis=1)                      # [E, 2]

    params = init_params(kp, D, NUM_LAYERS, EDGE_TYPES)

    plan = build_stage_plan(x, edge_index, edge_attr, params,
                            num_layers=NUM_LAYERS, edge_types=EDGE_TYPES,
                            nu=NU, nu_v2=NU_V2)

    out = rel_delay_stage_fused(plan, l2norm=L2NORM)
    out = jax.block_until_ready(out)

    # exact check vs a reference that mirrors the kernel's bf16 MXU arithmetic
    ref_bf16 = jax.block_until_ready(
        rel_delay_stage_ref(plan, l2norm=L2NORM, match_kernel_precision=True))
    # precision check vs the full-f32 (original-module-precision) reference
    ref_f32 = jax.block_until_ready(
        rel_delay_stage_ref(plan, l2norm=L2NORM, match_kernel_precision=False))

    assert out.shape == (N, D)
    assert jnp.allclose(out, ref_bf16, rtol=5e-4, atol=5e-4), "mismatch vs bf16 reference"
    assert jnp.allclose(out, ref_f32, rtol=5e-2, atol=5e-2), "bf16 precision drift vs f32 reference"

    print("KERNEL_OK")
</pallas_src>

<mosaic_0001>
module attributes {stable_mosaic.version = 11 : i64} {
  func.func @_fused_stage_kernel(%arg0: i32, %arg1: memref<9xi32, #tpu.memory_space<smem>>, %arg2: memref<9xi32, #tpu.memory_space<smem>>, %arg3: memref<9xi32, #tpu.memory_space<smem>>, %arg4: memref<9xi32, #tpu.memory_space<smem>>, %arg5: memref<9xi32, #tpu.memory_space<smem>>, %arg6: memref<1x128x128xbf16, #tpu.memory_space<vmem>>, %arg7: memref<128x128xf32, #tpu.memory_space<vmem>>, %arg8: memref<1x128x128xbf16, #tpu.memory_space<vmem>>, %arg9: memref<3x1x128xf32, #tpu.memory_space<vmem>>, %arg10: memref<128x128xf32, #tpu.memory_space<vmem>>, %arg11: memref<4x128x128xf32, #tpu.memory_space<vmem>>) attributes {dimension_semantics = [#tpu.dimension_semantics<arbitrary>], iteration_bounds = array<i64: 9>, scalar_prefetch = 5 : i64, scratch_operands = 1 : i64, tpu.core_type = #tpu.core_type<tc>, window_params = [{transform_indices = @transform_0, window_bounds = array<i64: 1, 128, 128>}, {pipeline_mode = #tpu.pipeline_mode<synchronous>, transform_indices = @transform_1, window_bounds = array<i64: 128, 128>}, {transform_indices = @transform_2, window_bounds = array<i64: 1, 128, 128>}, {pipeline_mode = #tpu.pipeline_mode<synchronous>, transform_indices = @transform_3, window_bounds = array<i64: 3, 1, 128>}, {pipeline_mode = #tpu.pipeline_mode<synchronous>, transform_indices = @transform_4, window_bounds = array<i64: 128, 128>}]} {
    %0 = arith.index_cast %arg0 : i32 to index
    %1 = memref.load %arg3[%0] : memref<9xi32, #tpu.memory_space<smem>>
    %c0_i32 = arith.constant 0 : i32
    %2 = arith.cmpi eq, %arg0, %c0_i32 : i32
    %3 = arith.extui %2 : i1 to i32
    %c0_i32_0 = arith.constant 0 : i32
    %4 = arith.cmpi ne, %3, %c0_i32_0 : i32
    scf.if %4 {
      %c0_14 = arith.constant 0 : index
      %c0_15 = arith.constant 0 : index
      %33 = vector.load %arg7[%c0_14, %c0_15] : memref<128x128xf32, #tpu.memory_space<vmem>>, vector<128x128xf32>
      %c0_16 = arith.constant 0 : index
      %c0_17 = arith.constant 0 : index
      %c0_18 = arith.constant 0 : index
      %34 = vector.load %arg11[%c0_16, %c0_17, %c0_18] : memref<4x128x128xf32, #tpu.memory_space<vmem>>, vector<1x128x128xf32>
      %35 = vector.shape_cast %34 : vector<1x128x128xf32> to vector<128x128xf32>
      %36 = vector.shape_cast %33 : vector<128x128xf32> to vector<1x128x128xf32>
      tpu.vector_store %arg11[%c0_16, %c0_17, %c0_18], %36 {strides = array<i32>} : memref<4x128x128xf32, #tpu.memory_space<vmem>>, vector<1x128x128xf32>,
    } else {
    }
    %5 = arith.index_cast %arg0 : i32 to index
    %6 = memref.load %arg2[%5] : memref<9xi32, #tpu.memory_space<smem>>
    %7 = arith.index_cast %6 : i32 to index
    %c0 = arith.constant 0 : index
    %c0_1 = arith.constant 0 : index
    %8 = vector.load %arg11[%7, %c0, %c0_1] : memref<4x128x128xf32, #tpu.memory_space<vmem>>, vector<1x128x128xf32>
    %9 = vector.shape_cast %8 : vector<1x128x128xf32> to vector<128x128xf32>
    %10 = arith.truncf %9 : vector<128x128xf32> to vector<128x128xbf16>
    %c0_2 = arith.constant 0 : index
    %c0_3 = arith.constant 0 : index
    %c0_4 = arith.constant 0 : index
    %11 = vector.load %arg8[%c0_2, %c0_3, %c0_4] : memref<1x128x128xbf16, #tpu.memory_space<vmem>>, vector<1x128x128xbf16>
    %12 = vector.shape_cast %11 : vector<1x128x128xbf16> to vector<128x128xbf16>
    %cst = arith.constant dense<0.000000e+00> : vector<128x128xf32>
    %13 = tpu.matmul %10, %12, %cst {dimension_numbers = #tpu.dot_dimension_numbers<[1], [0], [0], [1], [0, 0, 1, 1], [], []>} : vector<128x128xbf16>, vector<128x128xbf16>, vector<128x128xf32> -> vector<128x128xf32>
    %c0_5 = arith.constant 0 : index
    %c0_6 = arith.constant 0 : index
    %c0_7 = arith.constant 0 : index
    %14 = vector.load %arg6[%c0_5, %c0_6, %c0_7] : memref<1x128x128xbf16, #tpu.memory_space<vmem>>, vector<1x128x128xbf16>
    %15 = vector.shape_cast %14 : vector<1x128x128xbf16> to vector<128x128xbf16>
    %16 = arith.truncf %13 : vector<128x128xf32> to vector<128x128xbf16>
    %cst_8 = arith.constant dense<0.000000e+00> : vector<128x128xf32>
    %17 = tpu.matmul %15, %16, %cst_8 {dimension_numbers = #tpu.dot_dimension_numbers<[1], [0], [0], [1], [0, 0, 1, 1], [], []>} : vector<128x128xbf16>, vector<128x128xbf16>, vector<128x128xf32> -> vector<128x128xf32>
    %18 = arith.index_cast %arg0 : i32 to index
    %19 = memref.load %arg4[%18] : memref<9xi32, #tpu.memory_space<smem>>
    %c1_i32 = arith.constant 1 : i32
    %20 = arith.cmpi eq, %19, %c1_i32 : i32
    %21 = arith.extui %20 : i1 to i32
    %c0_i32_9 = arith.constant 0 : i32
    %22 = arith.cmpi ne, %21, %c0_i32_9 : i32
    scf.if %22 {
      %c0_14 = arith.constant 0 : index
      %c0_15 = arith.constant 0 : index
      %33 = vector.load %arg10[%c0_14, %c0_15] : memref<128x128xf32, #tpu.memory_space<vmem>>, vector<128x128xf32>
      tpu.vector_store %arg10[%c0_14, %c0_15], %17 {strides = array<i32>} : memref<128x128xf32, #tpu.memory_space<vmem>>, vector<128x128xf32>,
    } else {
    }
    %23 = arith.index_cast %arg0 : i32 to index
    %24 = memref.load %arg4[%23] : memref<9xi32, #tpu.memory_space<smem>>
    %c0_i32_10 = arith.constant 0 : i32
    %25 = arith.cmpi eq, %24, %c0_i32_10 : i32
    %26 = arith.extui %25 : i1 to i32
    %c0_i32_11 = arith.constant 0 : i32
    %27 = arith.cmpi ne, %26, %c0_i32_11 : i32
    scf.if %27 {
      %c0_14 = arith.constant 0 : index
      %c0_15 = arith.constant 0 : index
      %33 = vector.load %arg10[%c0_14, %c0_15] : memref<128x128xf32, #tpu.memory_space<vmem>>, vector<128x128xf32>
      %34 = arith.addf %33, %17 : vector<128x128xf32>
      %c0_16 = arith.constant 0 : index
      %c0_17 = arith.constant 0 : index
      %35 = vector.load %arg10[%c0_16, %c0_17] : memref<128x128xf32, #tpu.memory_space<vmem>>, vector<128x128xf32>
      tpu.vector_store %arg10[%c0_16, %c0_17], %34 {strides = array<i32>} : memref<128x128xf32, #tpu.memory_space<vmem>>, vector<128x128xf32>,
    } else {
    }
    %28 = arith.index_cast %arg0 : i32 to index
    %29 = memref.load %arg5[%28] : memref<9xi32, #tpu.memory_space<smem>>
    %c1_i32_12 = arith.constant 1 : i32
    %30 = arith.cmpi eq, %29, %c1_i32_12 : i32
    %31 = arith.extui %30 : i1 to i32
    %c0_i32_13 = arith.constant 0 : i32
    %32 = arith.cmpi ne, %31, %c0_i32_13 : i32
    scf.if %32 {
      %33 = arith.index_cast %1 : i32 to index
      %c0_14 = arith.constant 0 : index
      %c0_15 = arith.constant 0 : index
      %34 = vector.load %arg11[%33, %c0_14, %c0_15] : memref<4x128x128xf32, #tpu.memory_space<vmem>>, vector<1x128x128xf32>
      %35 = vector.shape_cast %34 : vector<1x128x128xf32> to vector<128x128xf32>
      %c0_16 = arith.constant 0 : index
      %c0_17 = arith.constant 0 : index
      %36 = vector.load %arg10[%c0_16, %c0_17] : memref<128x128xf32, #tpu.memory_space<vmem>>, vector<128x128xf32>
      %37 = arith.index_cast %1 : i32 to index
      %c0_18 = arith.constant 0 : index
      %c0_19 = arith.constant 0 : index
      %38 = vector.load %arg9[%37, %c0_18, %c0_19] : memref<3x1x128xf32, #tpu.memory_space<vmem>>, vector<1x1x128xf32>
      %39 = vector.shape_cast %38 : vector<1x1x128xf32> to vector<1x128xf32>
      %40 = vector.broadcast %39 : vector<1x128xf32> to vector<128x128xf32>
      %41 = arith.addf %36, %40 : vector<128x128xf32>
      %cst_20 = arith.constant 0.000000e+00 : f32
      %42 = vector.broadcast %cst_20 : f32 to vector<128x128xf32>
      %43 = arith.maximumf %41, %42 : vector<128x128xf32>
      %44 = arith.addf %35, %43 : vector<128x128xf32>
      %45 = arith.mulf %44, %44 : vector<128x128xf32>
      %cst_21 = arith.constant dense<0.000000e+00> : vector<128xf32>
      %46 = vector.multi_reduction <add>, %45, %cst_21 [1] : vector<128x128xf32> to vector<128xf32>
      %47 = vector.shape_cast %46 : vector<128xf32> to vector<128x1xf32>
      %cst_22 = arith.constant 1.000000e-24 : f32
      %48 = vector.broadcast %cst_22 : f32 to vector<128x1xf32>
      %49 = arith.maximumf %47, %48 : vector<128x1xf32>
      %50 = math.rsqrt %49 : vector<128x1xf32>
      %51 = vector.broadcast %50 : vector<128x1xf32> to vector<128x128xf32>
      %52 = arith.mulf %44, %51 : vector<128x128xf32>
      %c1_i32_23 = arith.constant 1 : i32
      %53 = arith.addi %1, %c1_i32_23 : i32
      %54 = arith.index_cast %53 : i32 to index
      %c0_24 = arith.constant 0 : index
      %c0_25 = arith.constant 0 : index
      %55 = vector.load %arg11[%54, %c0_24, %c0_25] : memref<4x128x128xf32, #tpu.memory_space<vmem>>, vector<1x128x128xf32>
      %56 = vector.shape_cast %55 : vector<1x128x128xf32> to vector<128x128xf32>
      %57 = vector.shape_cast %52 : vector<128x128xf32> to vector<1x128x128xf32>
      tpu.vector_store %arg11[%54, %c0_24, %c0_25], %57 {strides = array<i32>} : memref<4x128x128xf32, #tpu.memory_space<vmem>>, vector<1x128x128xf32>,
      %c0_26 = arith.constant 0 : index
      %c0_27 = arith.constant 0 : index
      %58 = vector.load %arg10[%c0_26, %c0_27] : memref<128x128xf32, #tpu.memory_space<vmem>>, vector<128x128xf32>
      tpu.vector_store %arg10[%c0_26, %c0_27], %52 {strides = array<i32>} : memref<128x128xf32, #tpu.memory_space<vmem>>, vector<128x128xf32>,
    } else {
    }
    return
  }
  func.func @transform_0(%arg0: i32, %arg1: memref<9xi32, #tpu.memory_space<smem>>, %arg2: memref<9xi32, #tpu.memory_space<smem>>, %arg3: memref<9xi32, #tpu.memory_space<smem>>, %arg4: memref<9xi32, #tpu.memory_space<smem>>, %arg5: memref<9xi32, #tpu.memory_space<smem>>) -> (i32, i32, i32) {
    %0 = arith.index_cast %arg0 : i32 to index
    %1 = memref.load %arg1[%0] : memref<9xi32, #tpu.memory_space<smem>>
    %c0_i32 = arith.constant 0 : i32
    %c0_i32_0 = arith.constant 0 : i32
    %c0_i32_1 = arith.constant 0 : i32
    return %1, %c0_i32, %c0_i32_0 : i32, i32, i32
  }
  func.func @transform_1(%arg0: i32, %arg1: memref<9xi32, #tpu.memory_space<smem>>, %arg2: memref<9xi32, #tpu.memory_space<smem>>, %arg3: memref<9xi32, #tpu.memory_space<smem>>, %arg4: memref<9xi32, #tpu.memory_space<smem>>, %arg5: memref<9xi32, #tpu.memory_space<smem>>) -> (i32, i32) {
    %c0_i32 = arith.constant 0 : i32
    %c0_i32_0 = arith.constant 0 : i32
    %c0_i32_1 = arith.constant 0 : i32
    return %c0_i32, %c0_i32_0 : i32, i32
  }
  func.func @transform_2(%arg0: i32, %arg1: memref<9xi32, #tpu.memory_space<smem>>, %arg2: memref<9xi32, #tpu.memory_space<smem>>, %arg3: memref<9xi32, #tpu.memory_space<smem>>, %arg4: memref<9xi32, #tpu.memory_space<smem>>, %arg5: memref<9xi32, #tpu.memory_space<smem>>) -> (i32, i32, i32) {
    %c0_i32 = arith.constant 0 : i32
    %c0_i32_0 = arith.constant 0 : i32
    %c0_i32_1 = arith.constant 0 : i32
    return %arg0, %c0_i32, %c0_i32_0 : i32, i32, i32
  }
  func.func @transform_3(%arg0: i32, %arg1: memref<9xi32, #tpu.memory_space<smem>>, %arg2: memref<9xi32, #tpu.memory_space<smem>>, %arg3: memref<9xi32, #tpu.memory_space<smem>>, %arg4: memref<9xi32, #tpu.memory_space<smem>>, %arg5: memref<9xi32, #tpu.memory_space<smem>>) -> (i32, i32, i32) {
    %c0_i32 = arith.constant 0 : i32
    %c0_i32_0 = arith.constant 0 : i32
    %c0_i32_1 = arith.constant 0 : i32
    %c0_i32_2 = arith.constant 0 : i32
    return %c0_i32, %c0_i32_0, %c0_i32_1 : i32, i32, i32
  }
  func.func @transform_4(%arg0: i32, %arg1: memref<9xi32, #tpu.memory_space<smem>>, %arg2: memref<9xi32, #tpu.memory_space<smem>>, %arg3: memref<9xi32, #tpu.memory_space<smem>>, %arg4: memref<9xi32, #tpu.memory_space<smem>>, %arg5: memref<9xi32, #tpu.memory_space<smem>>) -> (i32, i32) {
    %c0_i32 = arith.constant 0 : i32
    %c0_i32_0 = arith.constant 0 : i32
    %c0_i32_1 = arith.constant 0 : i32
    return %c0_i32, %c0_i32_0 : i32, i32
  }
}

</mosaic_0001>

<bundles_post_ra>
// kernel: tpu_custom_call.1
= control target key start
LH: loop header
LB: loop body
LE: loop exit
PB: predicated region body
PF: predicated region fallthrough
CT: control target
= control target key end

     0   :  { %s2206_s0 = inlined_call_operand.hbm [shape: s32[9], index: 0, kind: input, shape index: {}]   ;;  %s2207_s5 = inlined_call_operand.hbm [shape: bf16[4,128,128], index: 5, kind: input, shape index: {}]   ;;  %s2208_s6 = inlined_call_operand.hbm [shape: f32[128,128], index: 6, kind: input, shape index: {}]   ;;  %s2209_s7 = inlined_call_operand.hbm [shape: bf16[9,128,128], index: 7, kind: input, shape index: {}]   ;;  %s2210_s8 = inlined_call_operand.vmem [shape: f32[3,1,128], index: 8, kind: input, shape index: {}]   ;;  %s2211_s9 = inlined_call_operand.hbm [shape: f32[128,128], index: 9, kind: output, shape index: {}]   ;;  %s2212_s1 = inlined_call_operand.vmem [shape: s32[9], index: 1, kind: input, shape index: {}]   ;;  %s2213_s2 = inlined_call_operand.vmem [shape: s32[9], index: 2, kind: input, shape index: {}]   ;;  %s2214_s3 = inlined_call_operand.vmem [shape: s32[9], index: 3, kind: input, shape index: {}]   ;;  %s2215_s4 = inlined_call_operand.vmem [shape: s32[9], index: 4, kind: input, shape index: {}]  }
   0x1   :  { %2224 = sst [smem:[#allocation23_spill]] %s2207_s5  ;;  %s1382_s11 = scalar_lea.hbm %s2206_s0, 16 }
   0x2   :  { %p1383_p0 = scmp.ne.s32.totalorder %s2206_s0, %s1382_s11  ;;  %p1386_p1 = scmp.lt.u32.totalorder %s1382_s11, %s2206_s0 }
   0x4   :  { %p1388_p2 = pnand %p1386_p1, %p1383_p0 }
   0x6   :  { %1391 = shalt.err (!%p1388_p2)  }
   0x7   :  { %s1628_s16 = smov [#allocation4]   ;;  %s16_s21 = sshll.u32 %s2212_s1, 4  ;;  %s17_s21 = int_to_ptr.vmem [resolvable:$true] %s16_s21 }
   0x8   :  { %15 = dma.hbm_to_smem %s2206_s0, 16, %s1628_s16, [#allocation3] }
   0x9   :  { %s20_s24 = sshll.u32 %s2213_s2, 4  ;;  %s1392_s25 = scalar_lea.vmem %s17_s21, 16  ;;  %s21_s24 = int_to_ptr.vmem [resolvable:$true] %s20_s24 }
   0xa   :  { %p1393_p3 = scmp.ne.s32.totalorder %s17_s21, %s1392_s25  ;;  %p1397_p4 = scmp.lt.s32.totalorder %s17_s21, %s17_s21 }
   0xb   :  { %p1398_p5 = scmp.lt.s32.totalorder %s1392_s25, %s1392_s25 }
   0xd   :  { %p1399_p6 = por %p1398_p5, %p1397_p4 }
   0xf   :  { %p1400_p7 = pnand %p1399_p6, %p1393_p3 }
  0x11   :  { %1403 = shalt.err (!%p1400_p7)  }
  0x12   :  { %s1629_s26 = smov [#allocation5]   ;;  %s24_s28 = sshll.u32 %s2214_s3, 4  ;;  %s25_s28 = int_to_ptr.vmem [resolvable:$true] %s24_s28 }
  0x13   :  { %19 = dma.vmem_to_smem %s17_s21, 16, %s1629_s26, [#allocation3] }
  0x14   :  { %s1404_s1 = scalar_lea.vmem %s21_s24, 16  ;;  %p1409_p9 = scmp.lt.s32.totalorder %s21_s24, %s21_s24 }
  0x15   :  { %p1405_p8 = scmp.ne.s32.totalorder %s21_s24, %s1404_s1  ;;  %p1410_p10 = scmp.lt.s32.totalorder %s1404_s1, %s1404_s1 }
  0x17   :  { %p1411_p11 = por %p1410_p10, %p1409_p9 }
  0x19   :  { %p1412_p12 = pnand %p1411_p11, %p1405_p8 }
  0x1b   :  { %1415 = shalt.err (!%p1412_p12)  }
  0x1c   :  { %s1630_s2 = smov [#allocation6]   ;;  %s1416_s29 = scalar_lea.vmem %s25_s28, 16 }
  0x1d   :  { %23 = dma.vmem_to_smem %s21_s24, 16, %s1630_s2, [#allocation3] }
  0x1e   :  { %p1417_p13 = scmp.ne.s32.totalorder %s25_s28, %s1416_s29  ;;  %p1421_p0 = scmp.lt.s32.totalorder %s25_s28, %s25_s28 }
  0x1f   :  { %p1422_p1 = scmp.lt.s32.totalorder %s1416_s29, %s1416_s29 }
  0x21   :  { %p1423_p2 = por %p1422_p1, %p1421_p0 }
  0x23   :  { %p1424_p3 = pnand %p1423_p2, %p1417_p13 }
  0x25   :  { %1427 = shalt.err (!%p1424_p3)  }
  0x26   :  { %s1631_s30 = smov [#allocation7]   ;;  %s28_s11 = sshll.u32 %s2215_s4, 4  ;;  %s29_s11 = int_to_ptr.vmem [resolvable:$true] %s28_s11 }
  0x27   :  { %27 = dma.vmem_to_smem %s25_s28, 16, %s1631_s30, [#allocation3] }
  0x28   :  { %s1428_s12 = scalar_lea.vmem %s29_s11, 16  ;;  %p1433_p5 = scmp.lt.s32.totalorder %s29_s11, %s29_s11 }
  0x29   :  { %p1429_p4 = scmp.ne.s32.totalorder %s29_s11, %s1428_s12  ;;  %p1434_p6 = scmp.lt.s32.totalorder %s1428_s12, %s1428_s12 }
  0x2b   :  { %p1435_p7 = por %p1434_p6, %p1433_p5 }
  0x2d   :  { %p1436_p8 = pnand %p1435_p7, %p1429_p4 }
  0x2f   :  { %1439 = shalt.err (!%p1436_p8)  }
  0x30   :  { %s1632_s13 = smov [#allocation8]  }
  0x31   :  { %31 = dma.vmem_to_smem %s29_s11, 16, %s1632_s13, [#allocation3] }
  0x32   :  { %1582 = dma.done.wait [#allocation3], 80 }
  0x33   :  { %1583 = vsyncadd [#allocation3], 4294967216 }
  0x34   :  { %33 = sfence }
  0x35   :  { %34 = vsyncpa [#allocation10], 0 }
  0x36   :  { %36 = vsyncpa [#allocation10 + $0x1], 0 }
  0x37   :  { %37 = vsyncpa [#allocation13], 0 }
  0x38   :  { %38 = vsyncpa [#allocation11], 0  ;;  %s1717_s14 = smov 0   ;;  %s1719_s4 = smov 0  }
  0x39   :  { %s1721_s15 = smov 0   ;;  %s1723_s16 = smov 0  }
  0x3a   :  { %s1725_s17 = smov 0   ;;  %s1727_s18 = smov 0  }
  0x3b   :  { %s1729_s19 = smov 0  }
  0x3c LB: > { %s1753_s20 = sadd.s32 1, %s1626_s19   ;;  %s48_s21 = sld [smem:[#allocation4 + %s1626_s19]]  ;;  %s1626_s19 = sphi %s1729_s19, %s2255_s19   ;;  %s1622_s18 = sphi %s1727_s18, %s2254_s18   ;;  %s1618_s17 = sphi %s1725_s17, %s2253_s17   ;;  %s1614_s16 = sphi %s1723_s16, %s2252_s16   ;;  %s1610_s15 = sphi %s1721_s15, %s2251_s15   ;;  %s1606_s4 = sphi %s1719_s4, %s2250_s4   ;;  %s1602_s14 = sphi %s1717_s14, %s2249_s14  }
  0x3d   : > { %s49_s22 = sld [smem:[#allocation4 + %s1753_s20]]  ;;  %s53_s23 = sadd.s32 1, %s1622_s18 }
  0x3e   : > { %p60_p9 = scmp.ne.s32.totalorder %s1622_s18, %s1618_s17  ;;  %p2217_p10 = scmp.eq.s32.totalorder %s1626_s19, 0 }
  0x3f   : > { %p2216_p11 = scmp.lt.s32.totalorder %s1626_s19, 9  ;;  %s195_s25 = sand.u32 1, %s1626_s19  }
  0x40   : > { %p1764_p12 = por %p2217_p10, %p60_p9  ;;  %s197_s26 = sand.u32 1, %s1622_s18  }
  0x41   : > { %s1081_s0 = sshll.u32 %s197_s26, 6  ;;  %s1793_s11 = sadd.s32 4294967295, %s1626_s19  }
  0x42   : > { %p1774_p13 = pnand %p2216_p11, %p1764_p12  ;;  %s199_s1 = scalar_lea.vmem [#allocation9], %s1081_s0 }
  0x43   : > { %s50_s28 = ssub.s32 %s48_s21, %s49_s22  ;;  %s207_s2 = sshll.u32 %s199_s1, 4  ;;  %s1790_s2 = int_to_ptr.vmem [resolvable:$true] %s207_s2 }
  0x44   : > { %p51_p0 = scmp.eq.s32.totalorder %s50_s28, 0  ;;  %p66_p1 = scmp.ne.s32.totalorder %s1618_s17, %s1614_s16 }
  0x45   : > { %s1235_s29 = scalar_select %p1764_p12, [#allocation4], [#allocation16] }
  0x46   : > { %s1781_s30 = scalar_select %p51_p0, %s1622_s18, %s53_s23  }
  0x47   : > { %s1236_s3 = scalar_select %p1764_p12, %s1626_s19, 0 }
  0x48   : > { %s2257_s29 = smov (!%p2216_p11, %s1235_s29), [#allocation17]  ;;  %p2218_p2 = scmp.eq.s32.totalorder %s1793_s11, 0 }
  0x49   : > { %s2259_s3 = smov (!%p2216_p11, %s1236_s3), 0  ;;  %s2227_s5 = sld [smem:[#allocation23_spill]] }
  0x4a   : > { %s200_s10 = sld [smem:[%s2257_s29 + %s2259_s3]]  ;;  %p1807_p4 = por %p2218_p2, %p66_p1 }
  0x4b   : > { %s1811_s24 = scalar_lea.sflag [#allocation10], %s195_s25  ;;  %p1442_p6 = pneg %p1774_p13 }
  0x4c   : > { %s2228_s23 = scalar_select %p1807_p4, 1, 0 }
  0x4f   : > { %s1445_s28 = scalar_lea.hbm %s2227_s5, 4096 }
  0x50   : > { %s1135_s12 = sshll.u32 %s200_s10, 10 }
  0x51   : > { %s1803_s22 = scalar_lea.hbm %s2227_s5, %s1135_s12 }
  0x52   : > { %s1440_s16 = scalar_lea.hbm %s1803_s22, 1024  ;;  %p1446_p9 = scmp.lt.u32.totalorder %s1803_s22, %s2227_s5 }
  0x53   : > { %p1441_p5 = scmp.ne.s32.totalorder %s1803_s22, %s1440_s16  ;;  %p1447_p12 = scmp.lt.u32.totalorder %s1445_s28, %s1440_s16 }
  0x54   : > { %p1449_p1 = scmp.lt.u32.totalorder %s1440_s16, %s1803_s22 }
  0x55   : > { %p1443_p7 = pnand %p1442_p6, %p1441_p5  ;;  %p1448_p0 = por %p1447_p12, %p1446_p9 }
  0x57   : > { %p1444_p8 = pneg %p1443_p7  ;;  %p1450_p11 = por %p1449_p1, %p1448_p0 }
  0x59   : > { %p1451_p10 = pnand %p1450_p11, %p1444_p8 }
  0x5b   : > { %1454 = shalt.err (!%p1451_p10)
}
  0x5c   : > { %s1455_s25 = scalar_lea.vmem %s1790_s2, 1024  ;;  %s1633_s3 = smov [#allocation9]  }
  0x5d   : > { %p1456_p5 = scmp.ne.s32.totalorder %s1790_s2, %s1455_s25  ;;  %s1460_s10 = sshll.u32 %s1633_s3, 4  ;;  %s1461_s10 = int_to_ptr.vmem [resolvable:$false] %s1460_s10 }
  0x5e   : > { %s1462_s12 = scalar_lea.vmem %s1461_s10, 2048  ;;  %p1463_p2 = scmp.lt.s32.totalorder %s1790_s2, %s1461_s10 }
  0x5f   : > { %p1458_p7 = pnand %p1456_p5, %p1442_p6  ;;  %p1464_p9 = scmp.lt.s32.totalorder %s1462_s12, %s1455_s25 }
  0x61   : > { %p1459_p3 = pneg %p1458_p7  ;;  %p1465_p12 = por %p1464_p9, %p1463_p2 }
  0x63   : > { %p1466_p0 = pnand %p1465_p12, %p1459_p3 }
  0x65   : > { %1469 = shalt.err (!%p1466_p0)
}
  0x66   : > { %s2219_s13 = smov 64   ;;  %s2223_s21 = smov 4  }
  0x67   : > { %1256 = dma.hbm_to_vmem [thread:$0]  (!%p1774_p13), %s1803_s22, 1024, %s1790_s2, %s1811_s24, %s2219_s13, %s2219_s13, %s2223_s21  }
  0x68   : > { %p2229_p10 = scmp.eq.s32.totalorder %s1793_s11, 0  ;;  %p2230_p11 = scmp.ne.s32.totalorder %s1606_s4, %s1602_s14 }
  0x69   : > { %p1078_p3 = scmp.ge.s32.totalorder %s1626_s19, 1  ;;  %p166_p6 = scmp.lt.s32.totalorder %s1626_s19, 10 }
  0x6a   : > { %p1847_p2 = por %p2230_p11, %p2229_p10  ;;  %s1636_s27 = smov [#allocation12]  }
  0x6b   : > { %p1854_p1 = pnand %p1078_p3, %p166_p6  ;;  %s178_s0 = sshll.u32 %s1636_s27, 4  ;;  %s1858_s0 = int_to_ptr.vmem [resolvable:$true] %s178_s0 }
  0x6c   : > { %s2231_s16 = scalar_select %p1847_p2, 1, 0 }
  0x6d   : > { %s2232_s26 = scalar_select %p1854_p1, 1, 0 }
  0x6e   : > { %p1247_p13 = pneg %p1854_p1  ;;  %s97_s2 = ssub.s32 %s1626_s19, %s1753_s20 }
  0x6f   : > { %p2233_p5 = pmov %p2229_p10  ;;  %p1870_p9 = scmp.eq.s32.totalorder %s97_s2, 0 }
  0x70   : > { %s100_s28 = sadd.s32 1, %s1610_s15  ;;  %s219_s1 = sand.u32 1, %s1610_s15  }
  0x71   : > { %p1866_p7 = pnand %p1247_p13, %p2233_p5  ;;  %s1470_s3 = scalar_lea.hbm %s2208_s6, 2048 }
  0x72   : > { %s2235_s22 = scalar_select %p1870_p9, 1, 0 }
  0x73   : > { %p1471_p0 = scmp.ne.s32.totalorder %s2208_s6, %s1470_s3  ;;  %p1472_p10 = pneg %p1866_p7 }
  0x74   : > { %p1477_p6 = scmp.lt.u32.totalorder %s1470_s3, %s2208_s6 }
  0x75   : > { %p1473_p11 = pnand %p1472_p10, %p1471_p0 }
  0x77   : > { %p1474_p3 = pneg %p1473_p11 }
  0x79   : > { %p1479_p13 = pnand %p1477_p6, %p1474_p3 }
  0x7b   : > { %1482 = shalt.err (!%p1479_p13)
}
  0x7c   : > { %s1483_s13 = scalar_lea.vmem %s1858_s0, 2048  ;;  %p1491_p2 = scmp.lt.s32.totalorder %s1858_s0, %s1858_s0 }
  0x7d   : > { %p1484_p5 = scmp.ne.s32.totalorder %s1858_s0, %s1483_s13  ;;  %p1492_p4 = scmp.lt.s32.totalorder %s1483_s13, %s1483_s13 }
  0x7f   : > { %p1486_p8 = pnand %p1484_p5, %p1472_p10  ;;  %p1493_p1 = por %p1492_p4, %p1491_p2 }
  0x81   : > { %p1487_p12 = pneg %p1486_p8 }
  0x83   : > { %p1494_p9 = pnand %p1493_p1, %p1487_p12 }
  0x85   : > { %1497 = shalt.err (!%p1494_p9)
}
  0x86   : > { %s1637_s29 = smov 128   ;;  %s1638_s25 = smov 8  }
  0x87   : > { %1250 = dma.hbm_to_vmem [thread:$0]  (!%p1866_p7), %s2208_s6, 2048, %s1858_s0, [#allocation13], %s1637_s29, %s1637_s29, %s1638_s25  }
  0x88   : > { %p2236_p8 = scmp.ne.s32.totalorder %s2235_s22, 0  ;;  %p2237_p4 = scmp.eq.s32.totalorder %s1626_s19, 0 }
  0x89   : > { %p2238_p2 = scmp.ne.s32.totalorder %s1610_s15, %s1606_s4  ;;  %s1084_s12 = sshll.u32 %s219_s1, 6 }
  0x8a   : > { %s1902_s13 = scalar_select %p2236_p8, %s1610_s15, %s100_s28  }
  0x8b   : > { %p109_p1 = por %p2238_p2, %p2237_p4  ;;  %s1136_s27 = sshll.u32 %s1626_s19, 10 }
  0x8c   : > { %s1913_s5 = scalar_lea.hbm %s2209_s7, %s1136_s27  ;;  %s221_s14 = scalar_lea.vmem [#allocation14], %s1084_s12 }
  0x8d   : > { %s228_s3 = sshll.u32 %s221_s14, 4  ;;  %p2239_p7 = scmp.lt.s32.totalorder %s1626_s19, 9  ;;  %s1915_s3 = int_to_ptr.vmem [resolvable:$true] %s228_s3 }
  0x8e   : > { %s1498_s22 = scalar_lea.hbm %s1913_s5, 1024  ;;  %s1503_s1 = scalar_lea.hbm %s2209_s7, 9216 }
  0x8f   : > { %p1919_p9 = pnand %p2239_p7, %p109_p1  ;;  %p1499_p12 = scmp.ne.s32.totalorder %s1913_s5, %s1498_s22 }
  0x90   : > { %p1504_p3 = scmp.lt.u32.totalorder %s1913_s5, %s2209_s7  ;;  %p1505_p6 = scmp.lt.u32.totalorder %s1503_s1, %s1498_s22 }
  0x91   : > { %p1500_p0 = pneg %p1919_p9  ;;  %p1507_p5 = scmp.lt.u32.totalorder %s1498_s22, %s1913_s5 }
  0x92   : > { %p1506_p13 = por %p1505_p6, %p1504_p3 }
  0x93   : > { %p1501_p10 = pnand %p1500_p0, %p1499_p12 }
  0x94   : > { %p1508_p8 = por %p1507_p5, %p1506_p13 }
  0x95   : > { %p1502_p11 = pneg %p1501_p10 }
  0x97   : > { %p1509_p4 = pnand %p1508_p8, %p1502_p11 }
  0x99   : > { %1512 = shalt.err (!%p1509_p4)
}
  0x9a   : > { %s1513_s25 = scalar_lea.vmem %s1915_s3, 1024  ;;  %s1639_s10 = smov [#allocation14]  }
  0x9b   : > { %p1514_p2 = scmp.ne.s32.totalorder %s1915_s3, %s1513_s25  ;;  %s1518_s12 = sshll.u32 %s1639_s10, 4  ;;  %s1519_s12 = int_to_ptr.vmem [resolvable:$false] %s1518_s12 }
  0x9c   : > { %s1520_s27 = scalar_lea.vmem %s1519_s12, 2048  ;;  %p1521_p12 = scmp.lt.s32.totalorder %s1915_s3, %s1519_s12 }
  0x9d   : > { %p1516_p1 = pnand %p1514_p2, %p1500_p0  ;;  %p1522_p10 = scmp.lt.s32.totalorder %s1520_s27, %s1513_s25 }
  0x9f   : > { %p1517_p7 = pneg %p1516_p1  ;;  %p1523_p3 = por %p1522_p10, %p1521_p12 }
  0xa1   : > { %p1524_p6 = pnand %p1523_p3, %p1517_p7 }
  0xa3   : > { %1527 = shalt.err (!%p1524_p6)
}
  0xa4   : > { %s2241_s2 = smov 4   ;;  %s2242_s14 = smov 64  }
  0xa5   : > { %1259 = dma.hbm_to_vmem [thread:$0]  (!%p1919_p9), %s1913_s5, 1024, %s1915_s3, %s1811_s24, %s2242_s14, %s2242_s14, %s2241_s2  }
  0xa6   : > { %p2243_p0 = scmp.ne.s32.totalorder %s2232_s26, 0 }
  0xa7   : > { %s242_s22 = sand.u32 (!%p2243_p0), 1, %s1793_s11   ;;  %s244_s21 = sand.u32 (!%p2243_p0), 1, %s1618_s17  }
  0xa8   : > { %240 = sbr.rel (%p2243_p0) target bundleno = 963 (0x3c3), region = 36  ;;  %s1088_s28 = sshll.u32 (!%p2243_p0), %s244_s21, 6 }
  0xa9   : > { %s243_s1 = scalar_lea.sflag (!%p2243_p0), [#allocation10], %s242_s22  ;;  %s1956_s29 = scalar_lea.vmem (!%p2243_p0), [#allocation9], %s1088_s28 }
  0xaa   : > { %p2244_p11 = scmp.ne.s32.totalorder (!%p2243_p0), %s2228_s23, 0 }
  0xaf   : > { %1585 = dma.done.wait (%p2244_p11), %s243_s1, 1024  }
  0xb0   : > { %1587 = vsyncadd (%p2244_p11), %s243_s1, 4294966272  ;;  %p2245_p13 = scmp.eq.s32.totalorder %s1793_s11, 0 }
  0xb2   : > { %1589 = dma.done.wait (%p2245_p13), [#allocation13], 2048   ;;  %p2246_p9 = pmov %p2245_p13 }
  0xb3   : > { %s257_s5 = sand.u32 1, %s1606_s4   ;;  %p2247_p5 = scmp.ne.s32.totalorder %s2231_s16, 0 }
  0xb4   : > { %1591 = vsyncadd (%p2246_p9), [#allocation13], 4294965248  ;;  %s1090_s24 = sshll.u32 %s257_s5, 6 }
  0xb5   : > { %s1967_s26 = scalar_lea.vmem [#allocation14], %s1090_s24 }
  0xb6   : > { %1593 = dma.done.wait (%p2247_p5), %s243_s1, 1024  }
  0xb7   : > { %1595 = vsyncadd (%p2247_p5), %s243_s1, 4294966272  ;;  %s1974_s23 = sld [smem:[#allocation6 + %s1793_s11]]  ;;  %p2248_p8 = scmp.ne.s32.totalorder %s1793_s11, 0 }
  0xb8   : > { %v291_v0 = vld [vmem:[#allocation12] sm:$0xff] (!%p2248_p8)  ;;  %v292_v1 = vld [vmem:[#allocation12 + $0x8] sm:$0xff] (!%p2248_p8)  ;;  %v293_v2 = vld [vmem:[#allocation12 + $0x10] sm:$0xff] (!%p2248_p8) }
  0xb9   : > { %290 = sbr.rel (%p2248_p8) target bundleno = 193 (0xc1), region = 52  ;;  %307 = vst [vmem:[#allocation2] sm:$0xff] (!%p2248_p8), %v291_v0  ;;  %308 = vst [vmem:[#allocation2 + $0x8] sm:$0xff] (!%p2248_p8), %v292_v1  ;;  %v294_v3 = vld [vmem:[#allocation12 + $0x18] sm:$0xff] (!%p2248_p8)  ;;  %v295_v4 = vld [vmem:[#allocation12 + $0x20] sm:$0xff] (!%p2248_p8) }
  0xba   : > { %309 = vst [vmem:[#allocation2 + $0x10] sm:$0xff] (!%p2248_p8), %v293_v2  ;;  %v296_v5 = vld [vmem:[#allocation12 + $0x28] sm:$0xff] (!%p2248_p8)  ;;  %310 = vst [vmem:[#allocation2 + $0x18] sm:$0xff] (!%p2248_p8), %v294_v3  ;;  %v297_v6 = vld [vmem:[#allocation12 + $0x30] sm:$0xff] (!%p2248_p8) }
  0xbb   : > { %311 = vst [vmem:[#allocation2 + $0x20] sm:$0xff] (!%p2248_p8), %v295_v4  ;;  %312 = vst [vmem:[#allocation2 + $0x28] sm:$0xff] (!%p2248_p8), %v296_v5  ;;  %v298_v7 = vld [vmem:[#allocation12 + $0x38] sm:$0xff] (!%p2248_p8)  ;;  %v299_v8 = vld [vmem:[#allocation12 + $0x40] sm:$0xff] (!%p2248_p8) }
  0xbc   : > { %313 = vst [vmem:[#allocation2 + $0x30] sm:$0xff] (!%p2248_p8), %v297_v6  ;;  %314 = vst [vmem:[#allocation2 + $0x38] sm:$0xff] (!%p2248_p8), %v298_v7  ;;  %v300_v9 = vld [vmem:[#allocation12 + $0x48] sm:$0xff] (!%p2248_p8)  ;;  %v301_v10 = vld [vmem:[#allocation12 + $0x50] sm:$0xff] (!%p2248_p8) }
  0xbd   : > { %315 = vst [vmem:[#allocation2 + $0x40] sm:$0xff] (!%p2248_p8), %v299_v8  ;;  %v302_v11 = vld [vmem:[#allocation12 + $0x58] sm:$0xff] (!%p2248_p8)  ;;  %316 = vst [vmem:[#allocation2 + $0x48] sm:$0xff] (!%p2248_p8), %v300_v9  ;;  %v303_v12 = vld [vmem:[#allocation12 + $0x60] sm:$0xff] (!%p2248_p8) }
  0xbe   : > { %317 = vst [vmem:[#allocation2 + $0x50] sm:$0xff] (!%p2248_p8), %v301_v10  ;;  %318 = vst [vmem:[#allocation2 + $0x58] sm:$0xff] (!%p2248_p8), %v302_v11  ;;  %v304_v13 = vld [vmem:[#allocation12 + $0x68] sm:$0xff] (!%p2248_p8)  ;;  %v305_v14 = vld [vmem:[#allocation12 + $0x70] sm:$0xff] (!%p2248_p8) }
  0xbf   : > { %319 = vst [vmem:[#allocation2 + $0x60] sm:$0xff] (!%p2248_p8), %v303_v12  ;;  %320 = vst [vmem:[#allocation2 + $0x68] sm:$0xff] (!%p2248_p8), %v304_v13  ;;  %v306_v15 = vld [vmem:[#allocation12 + $0x78] sm:$0xff] (!%p2248_p8) }
  0xc0   : > { %321 = vst [vmem:[#allocation2 + $0x70] sm:$0xff] %v305_v14  ;;  %322 = vst [vmem:[#allocation2 + $0x78] sm:$0xff] %v306_v15 }
  0xc1 PF: > { %v1334_v16 = vld [vmem:[%s1967_s26] sm:$0xff]   ;;  %s323_s16 = sld [smem:[#allocation5 + %s1793_s11]]  ;;  %v1335_v17 = vld [vmem:[%s1967_s26 + $0x8] sm:$0xff]   ;;  %v1336_v18 = vld [vmem:[%s1967_s26 + $0x10] sm:$0xff]  }
  0xc2   : > { %1169 = vmatprep.subr.bf16.mxu0 %v1334_v16  ;;  %v1337_v19 = vld [vmem:[%s1967_s26 + $0x18] sm:$0xff]   ;;  %v1338_v23 = vld [vmem:[%s1967_s26 + $0x20] sm:$0xff]   ;;  %v1339_v24 = vld [vmem:[%s1967_s26 + $0x28] sm:$0xff]   ;;  %s680_s19 = sld [smem:[#allocation7 + %s1793_s11]] }
  0xc3   : > { %1170 = vmatpush3.bf16.msra.mxu0 %v1334_v16  ;;  %v1340_v25 = vld [vmem:[%s1967_s26 + $0x30] sm:$0xff]   ;;  %v1341_v26 = vld [vmem:[%s1967_s26 + $0x38] sm:$0xff]   ;;  %v1342_v48 = vld [vmem:[%s1956_s29] sm:$0xff]  }
  0xc4   : > { %1171 = vmatprep.subr.bf16.mxu0 %v1335_v17  ;;  %1217 = vmatprep.mubr.bf16.mxu1 %v1342_v48  ;;  %v1343_v9 = vld [vmem:[%s1956_s29 + $0x8] sm:$0xff]   ;;  %v1344_v10 = vld [vmem:[%s1956_s29 + $0x10] sm:$0xff]   ;;  %v1345_v11 = vld [vmem:[%s1956_s29 + $0x18] sm:$0xff]  }
  0xc5   : > { %v1346_v12 = vld [vmem:[%s1956_s29 + $0x20] sm:$0xff]   ;;  %v1347_v13 = vld [vmem:[%s1956_s29 + $0x28] sm:$0xff]   ;;  %v1348_v14 = vld [vmem:[%s1956_s29 + $0x30] sm:$0xff]  }
  0xc6   : > { %v1349_v15 = vld [vmem:[%s1956_s29 + $0x38] sm:$0xff]  }
  0xc7   : > { %s1092_s3 = sshll.u32 %s323_s16, 7  ;;  %1172 = vmatpush3.bf16.msra.mxu0 %v1335_v17 }
  0xc8   : > { %1173 = vmatprep.subr.bf16.mxu0 %v1336_v18  ;;  %s1983_s0 = scalar_lea.vmem [#allocation2], %s1092_s3  ;;  %p1109_p4 = scmp.ne.s32.totalorder %s680_s19, 1 }
  0xc9   : > { %v326_v20 = vld [vmem:[%s1983_s0] sm:$0xff]  ;;  %v327_v21 = vld [vmem:[%s1983_s0 + $0x8] sm:$0xff]  ;;  %v328_v27 = vld [vmem:[%s1983_s0 + $0x10] sm:$0xff] }
  0xca   : > { %v342_v22 = vpack.c.bf16 %v327_v21, %v326_v20  ;;  %v329_v28 = vld [vmem:[%s1983_s0 + $0x18] sm:$0xff]  ;;  %v330_v29 = vld [vmem:[%s1983_s0 + $0x20] sm:$0xff]  ;;  %v331_v30 = vld [vmem:[%s1983_s0 + $0x28] sm:$0xff] }
  0xcb   : > { %1174 = vmatpush3.bf16.msra.mxu0 %v1336_v18  ;;  %v343_v31 = vpack.c.bf16 %v329_v28, %v328_v27  ;;  %v344_v32 = vpack.c.bf16 %v331_v30, %v330_v29  ;;  %v332_v33 = vld [vmem:[%s1983_s0 + $0x30] sm:$0xff]  ;;  %v333_v34 = vld [vmem:[%s1983_s0 + $0x38] sm:$0xff]  ;;  %v334_v35 = vld [vmem:[%s1983_s0 + $0x40] sm:$0xff] }
  0xcc   : > { %1185 = vmatprep.mubr.bf16.mxu0 %v342_v22  ;;  %1175 = vmatprep.subr.bf16.mxu0 %v1337_v19  ;;  %v335_v36 = vld [vmem:[%s1983_s0 + $0x48] sm:$0xff]  ;;  %v345_v37 = vpack.c.bf16 %v333_v34, %v332_v33  ;;  %v336_v39 = vld [vmem:[%s1983_s0 + $0x50] sm:$0xff]  ;;  %v337_v40 = vld [vmem:[%s1983_s0 + $0x58] sm:$0xff] }
  0xcd   : > { %v346_v38 = vpack.c.bf16 %v335_v36, %v334_v35  ;;  %v338_v41 = vld [vmem:[%s1983_s0 + $0x60] sm:$0xff]  ;;  %v339_v42 = vld [vmem:[%s1983_s0 + $0x68] sm:$0xff]  ;;  %v347_v43 = vpack.c.bf16 %v337_v40, %v336_v39  ;;  %v340_v45 = vld [vmem:[%s1983_s0 + $0x70] sm:$0xff] }
  0xce   : > { %v348_v44 = vpack.c.bf16 %v339_v42, %v338_v41  ;;  %v341_v46 = vld [vmem:[%s1983_s0 + $0x78] sm:$0xff] }
  0xcf   : > { %1176 = vmatpush3.bf16.msra.mxu0 %v1337_v19  ;;  %v349_v47 = vpack.c.bf16 %v341_v46, %v340_v45 }
  0xd0   : > { %1177 = vmatprep.subr.bf16.mxu0 %v1338_v23 }
  0xd3   : > { %1178 = vmatpush3.bf16.msra.mxu0 %v1338_v23 }
  0xd4   : > { %1179 = vmatprep.subr.bf16.mxu0 %v1339_v24 }
  0xd7   : > { %1180 = vmatpush3.bf16.msra.mxu0 %v1339_v24 }
  0xd8   : > { %1181 = vmatprep.subr.bf16.mxu0 %v1340_v25 }
  0xdb   : > { %1182 = vmatpush3.bf16.msra.mxu0 %v1340_v25 }
  0xdc   : > { %1183 = vmatprep.subr.bf16.mxu0 %v1341_v26 }
  0xdf   : > { %1184 = vmatpush3.bf16.msra.mxu0 %v1341_v26 }
  0xe2   : > { %1186 = vmatmul.mubr.bf16.vlgmr.msra.gmra.mrb[0].mxu0 %v343_v31 }
  0xe3   : > { %1189 = vmatprep.mubr.bf16.mxu0 %v344_v32 }
  0xea   : > { %1190 = vmatmul.mubr.bf16.gmra.mrb[4].mxu0 %v345_v37 }
  0xeb   : > { %1193 = vmatprep.mubr.bf16.mxu0 %v346_v38 }
  0xf2   : > { %1194 = vmatmul.mubr.bf16.gmra.mrb[8].mxu0 %v347_v43 }
  0xf3   : > { %1197 = vmatprep.mubr.bf16.mxu0 %v348_v44 }
  0xfa   : > { %1198 = vmatmul.mubr.bf16.gmra.mrb[12].mxu0 %v349_v47 }
 0x1b5   : > { %v1187_v49 = vpop.f32.mrb[0].mxu0 }
 0x1b6   : > { %v448_v50 = vpop.f32.mrb[1].mxu0 }
 0x1b7   : > { %v1188_v51 = vpop.f32.mrb[2].mxu0 }
 0x1b8   : > { %v528_v52 = vpack.c.bf16 %v1188_v51, %v1187_v49  ;;  %v451_v53 = vpop.f32.mrb[3].mxu0 }
 0x1b9   : > { %v527_v54 = vpack.c.bf16 %v451_v53, %v448_v50 }
 0x1bb   : > { %1201 = vmatprep.subr.bf16.mxu1 %v527_v54 }
 0x1bc   : > { %1202 = vmatpush3.bf16.msra.mxu1 %v527_v54 }
 0x1bd   : > { %v1191_v55 = vpop.f32.mrb[4].mxu0  ;;  %1203 = vmatprep.subr.bf16.mxu1 %v528_v52 }
 0x1be   : > { %v464_v56 = vpop.f32.mrb[5].mxu0 }
 0x1bf   : > { %v1192_v57 = vpop.f32.mrb[6].mxu0 }
 0x1c0   : > { %v530_v58 = vpack.c.bf16 %v1192_v57, %v1191_v55  ;;  %v467_v59 = vpop.f32.mrb[7].mxu0  ;;  %1204 = vmatpush3.bf16.msra.mxu1 %v528_v52 }
 0x1c1   : > { %v529_v60 = vpack.c.bf16 %v467_v59, %v464_v56 }
 0x1c3   : > { %1205 = vmatprep.subr.bf16.mxu1 %v529_v60 }
 0x1c4   : > { %1206 = vmatpush3.bf16.msra.mxu1 %v529_v60 }
 0x1c5   : > { %v1195_v61 = vpop.f32.mrb[8].mxu0  ;;  %1207 = vmatprep.subr.bf16.mxu1 %v530_v58 }
 0x1c6   : > { %v480_v62 = vpop.f32.mrb[9].mxu0 }
 0x1c7   : > { %v1196_v63 = vpop.f32.mrb[10].mxu0 }
 0x1c8   : > { %v532_v0 = vpack.c.bf16 %v1196_v63, %v1195_v61  ;;  %v483_v1 = vpop.f32.mrb[11].mxu0  ;;  %1208 = vmatpush3.bf16.msra.mxu1 %v530_v58 }
 0x1c9   : > { %v531_v2 = vpack.c.bf16 %v483_v1, %v480_v62 }
 0x1cb   : > { %1209 = vmatprep.subr.bf16.mxu1 %v531_v2 }
 0x1cc   : > { %1210 = vmatpush3.bf16.msra.mxu1 %v531_v2 }
 0x1cd   : > { %v1199_v3 = vpop.f32.mrb[12].mxu0  ;;  %1211 = vmatprep.subr.bf16.mxu1 %v532_v0 }
 0x1ce   : > { %v496_v4 = vpop.f32.mrb[13].mxu0 }
 0x1cf   : > { %v1200_v5 = vpop.f32.mrb[14].mxu0 }
 0x1d0   : > { %v534_v6 = vpack.c.bf16 %v1200_v5, %v1199_v3  ;;  %v499_v7 = vpop.f32.mrb[15].mxu0  ;;  %1212 = vmatpush3.bf16.msra.mxu1 %v532_v0 }
 0x1d1   : > { %v533_v8 = vpack.c.bf16 %v499_v7, %v496_v4 }
 0x1d3   : > { %1213 = vmatprep.subr.bf16.mxu1 %v533_v8 }
 0x1d4   : > { %1214 = vmatpush3.bf16.msra.mxu1 %v533_v8 }
 0x1d5   : > { %1215 = vmatprep.subr.bf16.mxu1 %v534_v6 }
 0x1d8   : > { %1216 = vmatpush3.bf16.msra.mxu1 %v534_v6 }
 0x1db   : > { %1218 = vmatmul.mubr.bf16.vlgmr.msra.gmra.mrb[0].mxu1 %v1343_v9 }
 0x1dc   : > { %1221 = vmatprep.mubr.bf16.mxu1 %v1344_v10 }
 0x1e3   : > { %1222 = vmatmul.mubr.bf16.gmra.mrb[4].mxu1 %v1345_v11 }
 0x1e4   : > { %1225 = vmatprep.mubr.bf16.mxu1 %v1346_v12 }
 0x1eb   : > { %1226 = vmatmul.mubr.bf16.gmra.mrb[8].mxu1 %v1347_v13 }
 0x1ec   : > { %1229 = vmatprep.mubr.bf16.mxu1 %v1348_v14 }
 0x1f3   : > { %1230 = vmatmul.mubr.bf16.gmra.mrb[12].mxu1 %v1349_v15 }
 0x2ae   : > { %v1219_v16 = vpop.f32.mrb[0].mxu1 }
 0x2af   : > { %v617_v17 = vpop.f32.mrb[1].mxu1  ;;  %687 = vst [vmem:[#allocation15 + $0x10] sm:$0xff] (!%p1109_p4), %v1219_v16 }
 0x2b0   : > { %v1220_v18 = vpop.f32.mrb[2].mxu1  ;;  %685 = vst [vmem:[#allocation15] sm:$0xff] (!%p1109_p4), %v617_v17 }
 0x2b1   : > { %v620_v19 = vpop.f32.mrb[3].mxu1  ;;  %688 = vst [vmem:[#allocation15 + $0x18] sm:$0xff] (!%p1109_p4), %v1220_v18 }
 0x2b2   : > { %686 = vst [vmem:[#allocation15 + $0x8] sm:$0xff] (!%p1109_p4), %v620_v19 }
 0x2b6   : > { %v1223_v20 = vpop.f32.mrb[4].mxu1 }
 0x2b7   : > { %v633_v21 = vpop.f32.mrb[5].mxu1  ;;  %691 = vst [vmem:[#allocation15 + $0x30] sm:$0xff] (!%p1109_p4), %v1223_v20 }
 0x2b8   : > { %v1224_v22 = vpop.f32.mrb[6].mxu1  ;;  %689 = vst [vmem:[#allocation15 + $0x20] sm:$0xff] (!%p1109_p4), %v633_v21 }
 0x2b9   : > { %v636_v23 = vpop.f32.mrb[7].mxu1  ;;  %692 = vst [vmem:[#allocation15 + $0x38] sm:$0xff] (!%p1109_p4), %v1224_v22 }
 0x2ba   : > { %690 = vst [vmem:[#allocation15 + $0x28] sm:$0xff] (!%p1109_p4), %v636_v23 }
 0x2be   : > { %v1227_v24 = vpop.f32.mrb[8].mxu1 }
 0x2bf   : > { %v649_v25 = vpop.f32.mrb[9].mxu1  ;;  %695 = vst [vmem:[#allocation15 + $0x50] sm:$0xff] (!%p1109_p4), %v1227_v24 }
 0x2c0   : > { %v1228_v26 = vpop.f32.mrb[10].mxu1  ;;  %693 = vst [vmem:[#allocation15 + $0x40] sm:$0xff] (!%p1109_p4), %v649_v25 }
 0x2c1   : > { %v652_v27 = vpop.f32.mrb[11].mxu1  ;;  %696 = vst [vmem:[#allocation15 + $0x58] sm:$0xff] (!%p1109_p4), %v1228_v26 }
 0x2c2   : > { %694 = vst [vmem:[#allocation15 + $0x48] sm:$0xff] (!%p1109_p4), %v652_v27 }
 0x2c3   : > { %684 = sbr.rel (%p1109_p4) target bundleno = 715 (0x2cb), region = 56 }
 0x2c6   : > { %v2014_v28 = vpop.f32.mrb[12].mxu1 }
 0x2c7   : > { %v665_v29 = vpop.f32.mrb[13].mxu1  ;;  %699 = vst [vmem:[#allocation15 + $0x70] sm:$0xff] (!%p1109_p4), %v2014_v28 }
 0x2c8   : > { %v2016_v30 = vpop.f32.mrb[14].mxu1  ;;  %697 = vst [vmem:[#allocation15 + $0x60] sm:$0xff] (!%p1109_p4), %v665_v29 }
 0x2c9   : > { %v668_v31 = vpop.f32.mrb[15].mxu1  ;;  %700 = vst [vmem:[#allocation15 + $0x78] sm:$0xff] (!%p1109_p4), %v2016_v30 }
 0x2ca   : > { %698 = vst [vmem:[#allocation15 + $0x68] sm:$0xff] %v668_v31 }
 0x2cb PF: > { %s701_s25 = sld [smem:[#allocation7 + %s1793_s11]] }
 0x2d1   : > { %p1110_p2 = scmp.ne.s32.totalorder %s701_s25, 0 }
 0x2d2   : > { %v706_v32 = vld [vmem:[#allocation15] sm:$0xff] (!%p1110_p2)  ;;  %v707_v33 = vld [vmem:[#allocation15 + $0x8] sm:$0xff] (!%p1110_p2)  ;;  %v708_v34 = vld [vmem:[#allocation15 + $0x10] sm:$0xff] (!%p1110_p2) }
 0x2d3   : > { %705 = sbr.rel (%p1110_p2) target bundleno = 733 (0x2dd), region = 60  ;;  %v722_v35 = vadd.f32 (!%p1110_p2), %v706_v32, %v617_v17  ;;  %v723_v36 = vadd.f32 (!%p1110_p2), %v707_v33, %v620_v19  ;;  %v724_v37 = vadd.f32 (!%p1110_p2), %v1219_v16, %v708_v34  ;;  %v709_v38 = vld [vmem:[#allocation15 + $0x18] sm:$0xff] (!%p1110_p2)  ;;  %v710_v39 = vld [vmem:[#allocation15 + $0x20] sm:$0xff] (!%p1110_p2)  ;;  %v711_v40 = vld [vmem:[#allocation15 + $0x28] sm:$0xff] (!%p1110_p2) }
 0x2d4   : > { %v725_v41 = vadd.f32 (!%p1110_p2), %v1220_v18, %v709_v38  ;;  %v726_v42 = vadd.f32 (!%p1110_p2), %v710_v39, %v633_v21  ;;  %v727_v43 = vadd.f32 (!%p1110_p2), %v711_v40, %v636_v23  ;;  %v712_v44 = vld [vmem:[#allocation15 + $0x30] sm:$0xff] (!%p1110_p2)  ;;  %v713_v45 = vld [vmem:[#allocation15 + $0x38] sm:$0xff] (!%p1110_p2)  ;;  %v714_v46 = vld [vmem:[#allocation15 + $0x40] sm:$0xff] (!%p1110_p2) }
 0x2d5   : > { %738 = vst [vmem:[#allocation15] sm:$0xff] (!%p1110_p2), %v722_v35  ;;  %739 = vst [vmem:[#allocation15 + $0x8] sm:$0xff] (!%p1110_p2), %v723_v36  ;;  %v728_v47 = vadd.f32 (!%p1110_p2), %v1223_v20, %v712_v44  ;;  %v729_v48 = vadd.f32 (!%p1110_p2), %v1224_v22, %v713_v45  ;;  %v730_v49 = vadd.f32 (!%p1110_p2), %v714_v46, %v649_v25  ;;  %v715_v50 = vld [vmem:[#allocation15 + $0x48] sm:$0xff] (!%p1110_p2)  ;;  %v716_v51 = vld [vmem:[#allocation15 + $0x50] sm:$0xff] (!%p1110_p2) }
 0x2d6   : > { %740 = vst [vmem:[#allocation15 + $0x10] sm:$0xff] (!%p1110_p2), %v724_v37  ;;  %v717_v52 = vld [vmem:[#allocation15 + $0x58] sm:$0xff] (!%p1110_p2)  ;;  %741 = vst [vmem:[#allocation15 + $0x18] sm:$0xff] (!%p1110_p2), %v725_v41  ;;  %v731_v53 = vadd.f32 (!%p1110_p2), %v715_v50, %v652_v27  ;;  %v732_v54 = vadd.f32 (!%p1110_p2), %v1227_v24, %v716_v51  ;;  %v718_v56 = vld [vmem:[#allocation15 + $0x60] sm:$0xff] (!%p1110_p2) }
 0x2d7   : > { %742 = vst [vmem:[#allocation15 + $0x20] sm:$0xff] (!%p1110_p2), %v726_v42  ;;  %743 = vst [vmem:[#allocation15 + $0x28] sm:$0xff] (!%p1110_p2), %v727_v43  ;;  %v733_v55 = vadd.f32 (!%p1110_p2), %v1228_v26, %v717_v52  ;;  %v719_v57 = vld [vmem:[#allocation15 + $0x68] sm:$0xff] (!%p1110_p2)  ;;  %v720_v58 = vld [vmem:[#allocation15 + $0x70] sm:$0xff] (!%p1110_p2)  ;;  %v734_v59 = vadd.f32 (!%p1110_p2), %v718_v56, %v665_v29 }
 0x2d8   : > { %744 = vst [vmem:[#allocation15 + $0x30] sm:$0xff] (!%p1110_p2), %v728_v47  ;;  %745 = vst [vmem:[#allocation15 + $0x38] sm:$0xff] (!%p1110_p2), %v729_v48  ;;  %v735_v60 = vadd.f32 (!%p1110_p2), %v719_v57, %v668_v31  ;;  %v736_v61 = vadd.f32 (!%p1110_p2), %v2014_v28, %v720_v58  ;;  %v721_v62 = vld [vmem:[#allocation15 + $0x78] sm:$0xff] (!%p1110_p2) }
 0x2d9   : > { %746 = vst [vmem:[#allocation15 + $0x40] sm:$0xff] (!%p1110_p2), %v730_v49  ;;  %747 = vst [vmem:[#allocation15 + $0x48] sm:$0xff] (!%p1110_p2), %v731_v53  ;;  %v737_v63 = vadd.f32 (!%p1110_p2), %v2016_v30, %v721_v62 }
 0x2da   : > { %748 = vst [vmem:[#allocation15 + $0x50] sm:$0xff] %v732_v54  ;;  %749 = vst [vmem:[#allocation15 + $0x58] sm:$0xff] %v733_v55 }
 0x2db   : > { %750 = vst [vmem:[#allocation15 + $0x60] sm:$0xff] %v734_v59  ;;  %751 = vst [vmem:[#allocation15 + $0x68] sm:$0xff] %v735_v60 }
 0x2dc   : > { %752 = vst [vmem:[#allocation15 + $0x70] sm:$0xff] %v736_v61  ;;  %753 = vst [vmem:[#allocation15 + $0x78] sm:$0xff] %v737_v63 }
 0x2dd PF: > { %s754_s10 = sld [smem:[#allocation8 + %s1793_s11]] }
 0x2e3   : > { %p1111_p1 = scmp.ne.s32.totalorder %s754_s10, 1 }
 0x2e4   : > { %s1112_s12 = sshll.u32 (!%p1111_p1), %s1974_s23, 7  ;;  %v779_v0 = vld [vmem:[#allocation15 + $0x10] sm:$0xff] (!%p1111_p1)  ;;  %s793_s14 = scalar_lea.vmem (!%p1111_p1), %s2210_s8, %s1974_s23  ;;  %v777_v1 = vld [vmem:[#allocation15] sm:$0xff] (!%p1111_p1)  ;;  %v780_v2 = vld [vmem:[#allocation15 + $0x18] sm:$0xff] (!%p1111_p1) }
 0x2e5   : > { %758 = sbr.rel (%p1111_p1) target bundleno = 937 (0x3a9), region = 64  ;;  %v2029_v3 = vld [vmem:[%s793_s14] ss:$0 sm:$0xff] (!%p1111_p1)  ;;  %v778_v4 = vld [vmem:[#allocation15 + $0x8] sm:$0xff] (!%p1111_p1)  ;;  %s2031_s22 = scalar_lea.vmem (!%p1111_p1), [#allocation2], %s1112_s12  ;;  %v781_v19 = vld [vmem:[#allocation15 + $0x20] sm:$0xff] (!%p1111_p1) }
 0x2e6   : > { %v782_v5 = vld [vmem:[#allocation15 + $0x28] sm:$0xff] (!%p1111_p1)  ;;  %v803_v7 = vadd.f32 (!%p1111_p1), %v2029_v3, %v779_v0  ;;  %v801_v8 = vadd.f32 (!%p1111_p1), %v2029_v3, %v777_v1  ;;  %v804_v9 = vadd.f32 (!%p1111_p1), %v2029_v3, %v780_v2  ;;  %v802_v10 = vadd.f32 (!%p1111_p1), %v2029_v3, %v778_v4  ;;  %v761_v11 = vld [vmem:[%s2031_s22] sm:$0xff] (!%p1111_p1)  ;;  %v764_v12 = vld [vmem:[%s2031_s22 + $0x18] sm:$0xff] (!%p1111_p1) }
 0x2e7   : > { %v763_v6 = vld [vmem:[%s2031_s22 + $0x10] sm:$0xff] (!%p1111_p1)  ;;  %v762_v13 = vld [vmem:[%s2031_s22 + $0x8] sm:$0xff] (!%p1111_p1)  ;;  %v806_v14 = vadd.f32 (!%p1111_p1), %v2029_v3, %v782_v5  ;;  %v805_v22 = vadd.f32 (!%p1111_p1), %v2029_v3, %v781_v19  ;;  %v784_v23 = vld [vmem:[#allocation15 + $0x38] sm:$0xff] (!%p1111_p1) }
 0x2e8   : > { %v819_v15 = vmax.f32 (!%p1111_p1), %v803_v7, 0.0  ;;  %v817_v16 = vmax.f32 (!%p1111_p1), %v801_v8, 0.0  ;;  %v820_v17 = vmax.f32 (!%p1111_p1), %v804_v9, 0.0  ;;  %v818_v18 = vmax.f32 (!%p1111_p1), %v802_v10, 0.0  ;;  %v766_v20 = vld [vmem:[%s2031_s22 + $0x28] sm:$0xff] (!%p1111_p1)  ;;  %v783_v24 = vld [vmem:[#allocation15 + $0x30] sm:$0xff] (!%p1111_p1) }
 0x2e9   : > { %v822_v21 = vmax.f32 (!%p1111_p1), %v806_v14, 0.0  ;;  %v765_v29 = vld [vmem:[%s2031_s22 + $0x20] sm:$0xff] (!%p1111_p1)  ;;  %v821_v30 = vmax.f32 (!%p1111_p1), %v805_v22, 0.0  ;;  %v808_v31 = vadd.f32 (!%p1111_p1), %v2029_v3, %v784_v23  ;;  %v807_v32 = vadd.f32 (!%p1111_p1), %v2029_v3, %v783_v24  ;;  %v786_v33 = vld [vmem:[#allocation15 + $0x48] sm:$0xff] (!%p1111_p1)  ;;  %v785_v34 = vld [vmem:[#allocation15 + $0x40] sm:$0xff] (!%p1111_p1) }
 0x2ea   : > { %v2044_v25 = vadd.f32 (!%p1111_p1), %v819_v15, %v763_v6  ;;  %v2046_v26 = vadd.f32 (!%p1111_p1), %v817_v16, %v761_v11  ;;  %v2048_v27 = vadd.f32 (!%p1111_p1), %v820_v17, %v764_v12  ;;  %v2050_v28 = vadd.f32 (!%p1111_p1), %v818_v18, %v762_v13  ;;  %v788_v42 = vld [vmem:[#allocation15 + $0x58] sm:$0xff] (!%p1111_p1)  ;;  %v768_v44 = vld [vmem:[%s2031_s22 + $0x38] sm:$0xff] (!%p1111_p1)  ;;  %v767_v45 = vld [vmem:[%s2031_s22 + $0x30] sm:$0xff] (!%p1111_p1) }
 0x2eb   : > { %v2059_v37 = vadd.f32 (!%p1111_p1), %v822_v21, %v766_v20  ;;  %v824_v40 = vmax.f32 (!%p1111_p1), %v808_v31, 0.0  ;;  %v823_v41 = vmax.f32 (!%p1111_p1), %v807_v32, 0.0  ;;  %v2065_v43 = vadd.f32 (!%p1111_p1), %v821_v30, %v765_v29  ;;  %v787_v48 = vld [vmem:[#allocation15 + $0x50] sm:$0xff] (!%p1111_p1)  ;;  %v790_v57 = vld [vmem:[#allocation15 + $0x68] sm:$0xff] (!%p1111_p1)  ;;  %v770_v58 = vld [vmem:[%s2031_s22 + $0x48] sm:$0xff] (!%p1111_p1) }
 0x2ec   : > { %v851_v35 = vmul.f32 %v2044_v25, %v2044_v25  ;;  %v849_v36 = vmul.f32 %v2046_v26, %v2046_v26  ;;  %v852_v38 = vmul.f32 %v2048_v27, %v2048_v27  ;;  %v850_v39 = vmul.f32 %v2050_v28, %v2050_v28  ;;  %v769_v59 = vld [vmem:[%s2031_s22 + $0x40] sm:$0xff]  ;;  %v789_v60 = vld [vmem:[#allocation15 + $0x60] sm:$0xff]  ;;  %v772_v5 = vld [vmem:[%s2031_s22 + $0x58] sm:$0xff] }
 0x2ed   : > { %v810_v46 = vadd.f32 %v2029_v3, %v786_v33  ;;  %v809_v47 = vadd.f32 %v2029_v3, %v785_v34  ;;  %v812_v49 = vadd.f32 %v2029_v3, %v788_v42  ;;  %v2072_v50 = vadd.f32 %v824_v40, %v768_v44  ;;  %v771_v6 = vld [vmem:[%s2031_s22 + $0x50] sm:$0xff]  ;;  %v792_v8 = vld [vmem:[#allocation15 + $0x78] sm:$0xff]  ;;  %v791_v9 = vld [vmem:[#allocation15 + $0x70] sm:$0xff] }
 0x2ee   : > { %869 = vadd.xlane.f32.xlu1 %v851_v35  ;;  %865 = vadd.xlane.f32.xlu0 %v849_v36  ;;  %v2074_v51 = vadd.f32 %v823_v41, %v767_v45  ;;  %v811_v52 = vadd.f32 %v2029_v3, %v787_v48  ;;  %v854_v53 = vmul.f32 %v2059_v37, %v2059_v37  ;;  %v774_v16 = vld [vmem:[%s2031_s22 + $0x68] sm:$0xff]  ;;  %v773_v19 = vld [vmem:[%s2031_s22 + $0x60] sm:$0xff]  ;;  %v776_v30 = vld [vmem:[%s2031_s22 + $0x78] sm:$0xff] }
 0x2ef   : > { %v853_v54 = vmul.f32 %v2065_v43, %v2065_v43  ;;  %v826_v55 = vmax.f32 %v810_v46, 0.0  ;;  %v825_v56 = vmax.f32 %v809_v47, 0.0  ;;  %v828_v61 = vmax.f32 %v812_v49, 0.0  ;;  %v775_v31 = vld [vmem:[%s2031_s22 + $0x70] sm:$0xff] }
 0x2f0   : > { %v856_v62 = vmul.f32 %v2072_v50, %v2072_v50  ;;  %v855_v63 = vmul.f32 %v2074_v51, %v2074_v51  ;;  %v827_v0 = vmax.f32 %v811_v52, 0.0  ;;  %v814_v1 = vadd.f32 %v2029_v3, %v790_v57 }
 0x2f1   : > { %v2088_v2 = vadd.f32 %v826_v55, %v770_v58  ;;  %v2090_v4 = vadd.f32 %v825_v56, %v769_v59  ;;  %v813_v7 = vadd.f32 %v2029_v3, %v789_v60  ;;  %v2095_v10 = vadd.f32 %v828_v61, %v772_v5 }
 0x2f2   : > { %871 = vadd.xlane.f32.xlu1 %v852_v38  ;;  %867 = vadd.xlane.f32.xlu0 %v850_v39  ;;  %v2097_v11 = vadd.f32 %v827_v0, %v771_v6  ;;  %v830_v12 = vmax.f32 %v814_v1, 0.0  ;;  %v816_v13 = vadd.f32 %v2029_v3, %v792_v8  ;;  %v815_v18 = vadd.f32 %v2029_v3, %v791_v9 }
 0x2f3   : > { %v858_v14 = vmul.f32 %v2088_v2, %v2088_v2  ;;  %v857_v15 = vmul.f32 %v2090_v4, %v2090_v4  ;;  %v829_v17 = vmax.f32 %v813_v7, 0.0  ;;  %v860_v20 = vmul.f32 %v2095_v10, %v2095_v10 }
 0x2f4   : > { %v2109_v21 = vadd.f32 %v830_v12, %v774_v16  ;;  %v859_v22 = vmul.f32 %v2097_v11, %v2097_v11  ;;  %v832_v24 = vmax.f32 %v816_v13, 0.0  ;;  %v831_v29 = vmax.f32 %v815_v18, 0.0 }
 0x2f5   : > { %v2113_v23 = vadd.f32 %v829_v17, %v773_v19 }
 0x2f6   : > { %875 = vadd.xlane.f32.xlu1 %v854_v53  ;;  %873 = vadd.xlane.f32.xlu0 %v853_v54  ;;  %v862_v3 = vmul.f32 %v2109_v21, %v2109_v21  ;;  %v2121_v33 = vadd.f32 %v832_v24, %v776_v30  ;;  %v2123_v34 = vadd.f32 %v831_v29, %v775_v31 }
 0x2f7   : > { %v861_v32 = vmul.f32 %v2113_v23, %v2113_v23 }
 0x2f8   : > { %v864_v35 = vmul.f32 %v2121_v33, %v2121_v33  ;;  %v863_v36 = vmul.f32 %v2123_v34, %v2123_v34 }
 0x2fa   : > { %879 = vadd.xlane.f32.xlu1 %v856_v62  ;;  %877 = vadd.xlane.f32.xlu0 %v855_v63 }
 0x2fe   : > { %883 = vadd.xlane.f32.xlu1 %v858_v14  ;;  %881 = vadd.xlane.f32.xlu0 %v857_v15 }
 0x302   : > { %887 = vadd.xlane.f32.xlu1 %v860_v20  ;;  %885 = vadd.xlane.f32.xlu0 %v859_v22 }
 0x306   : > { %891 = vadd.xlane.f32.xlu1 %v862_v3  ;;  %889 = vadd.xlane.f32.xlu0 %v861_v32 }
 0x30a   : > { %895 = vadd.xlane.f32.xlu1 %v864_v35  ;;  %893 = vadd.xlane.f32.xlu0 %v863_v36 }
 0x37b   : > { %v870_v38 = vpop.xlane.xlu1 %869  ;;  %v866_v39 = vpop.xlane.xlu0 %865 }
 0x37c   : > { %v899_v40 = vmax.f32 %v870_v38, 1e-24  ;;  %v897_v41 = vmax.f32 %v866_v39, 1e-24 }
 0x37e   : > { %1350 = vrsqrt.f32 %v899_v40 }
 0x37f   : > { %1352 = vrsqrt.f32 %v897_v41  ;;  %v872_v42 = vpop.xlane.xlu1 %871  ;;  %v868_v44 = vpop.xlane.xlu0 %867 }
 0x380   : > { %v900_v45 = vmax.f32 %v872_v42, 1e-24  ;;  %v898_v46 = vmax.f32 %v868_v44, 1e-24 }
 0x382   : > { %1354 = vrsqrt.f32 %v900_v45 }
 0x383   : > { %1356 = vrsqrt.f32 %v898_v46  ;;  %v876_v47 = vpop.xlane.xlu1 %875  ;;  %v874_v48 = vpop.xlane.xlu0 %873 }
 0x384   : > { %v902_v49 = vmax.f32 %v876_v47, 1e-24  ;;  %v901_v52 = vmax.f32 %v874_v48, 1e-24 }
 0x386   : > { %1358 = vrsqrt.f32 %v902_v49 }
 0x387   : > { %1360 = vrsqrt.f32 %v901_v52  ;;  %v880_v53 = vpop.xlane.xlu1 %879  ;;  %v878_v54 = vpop.xlane.xlu0 %877 }
 0x388   : > { %v1351_v55 = vpop.eup %1350  ;;  %v904_v56 = vmax.f32 %v880_v53, 1e-24  ;;  %v903_v57 = vmax.f32 %v878_v54, 1e-24 }
 0x389   : > { %v1353_v58 = vpop.eup %1352  ;;  %v931_v59 = vmul.f32 %v1351_v55, %v2044_v25 }
 0x38a   : > { %v929_v60 = vmul.f32 %v1353_v58, %v2046_v26  ;;  %1362 = vrsqrt.f32 %v904_v56 }
 0x38b   : > { %1117 = vst [vmem:[%s2031_s22 + $0x90] sm:$0xff] %v931_v59  ;;  %966 = vst [vmem:[#allocation15 + $0x10] sm:$0xff] %v931_v59  ;;  %1364 = vrsqrt.f32 %v903_v57  ;;  %v884_v61 = vpop.xlane.xlu1 %883  ;;  %v882_v62 = vpop.xlane.xlu0 %881 }
 0x38c   : > { %v1355_v63 = vpop.eup %1354  ;;  %1115 = vst [vmem:[%s2031_s22 + $0x80] sm:$0xff] %v929_v60  ;;  %964 = vst [vmem:[#allocation15] sm:$0xff] %v929_v60  ;;  %v906_v0 = vmax.f32 %v884_v61, 1e-24  ;;  %v905_v1 = vmax.f32 %v882_v62, 1e-24 }
 0x38d   : > { %v1357_v5 = vpop.eup %1356  ;;  %v932_v6 = vmul.f32 %v1355_v63, %v2048_v27 }
 0x38e   : > { %v930_v25 = vmul.f32 %v1357_v5, %v2050_v28  ;;  %1366 = vrsqrt.f32 %v906_v0 }
 0x38f   : > { %1118 = vst [vmem:[%s2031_s22 + $0x98] sm:$0xff] %v932_v6  ;;  %967 = vst [vmem:[#allocation15 + $0x18] sm:$0xff] %v932_v6  ;;  %1368 = vrsqrt.f32 %v905_v1  ;;  %v888_v26 = vpop.xlane.xlu1 %887  ;;  %v886_v7 = vpop.xlane.xlu0 %885 }
 0x390   : > { %v1359_v8 = vpop.eup %1358  ;;  %1116 = vst [vmem:[%s2031_s22 + $0x88] sm:$0xff] %v930_v25  ;;  %965 = vst [vmem:[#allocation15 + $0x8] sm:$0xff] %v930_v25  ;;  %v908_v9 = vmax.f32 %v888_v26, 1e-24  ;;  %v907_v12 = vmax.f32 %v886_v7, 1e-24 }
 0x391   : > { %v1361_v13 = vpop.eup %1360  ;;  %v934_v14 = vmul.f32 %v1359_v8, %v2059_v37 }
 0x392   : > { %v933_v27 = vmul.f32 %v1361_v13, %v2065_v43  ;;  %1370 = vrsqrt.f32 %v908_v9 }
 0x393   : > { %1120 = vst [vmem:[%s2031_s22 + $0xa8] sm:$0xff] %v934_v14  ;;  %969 = vst [vmem:[#allocation15 + $0x28] sm:$0xff] %v934_v14  ;;  %1372 = vrsqrt.f32 %v907_v12  ;;  %v892_v28 = vpop.xlane.xlu1 %891  ;;  %v890_v15 = vpop.xlane.xlu0 %889 }
 0x394   : > { %v1363_v16 = vpop.eup %1362  ;;  %1119 = vst [vmem:[%s2031_s22 + $0xa0] sm:$0xff] %v933_v27  ;;  %968 = vst [vmem:[#allocation15 + $0x20] sm:$0xff] %v933_v27  ;;  %v910_v17 = vmax.f32 %v892_v28, 1e-24  ;;  %v909_v18 = vmax.f32 %v890_v15, 1e-24 }
 0x395   : > { %v1365_v19 = vpop.eup %1364  ;;  %v936_v20 = vmul.f32 %v1363_v16, %v2072_v50 }
 0x396   : > { %v935_v37 = vmul.f32 %v1365_v19, %v2074_v51  ;;  %1374 = vrsqrt.f32 %v910_v17 }
 0x397   : > { %1122 = vst [vmem:[%s2031_s22 + $0xb8] sm:$0xff] %v936_v20  ;;  %971 = vst [vmem:[#allocation15 + $0x38] sm:$0xff] %v936_v20  ;;  %1376 = vrsqrt.f32 %v909_v18  ;;  %v896_v43 = vpop.xlane.xlu1 %895  ;;  %v894_v22 = vpop.xlane.xlu0 %893 }
 0x398   : > { %v1367_v24 = vpop.eup %1366  ;;  %1121 = vst [vmem:[%s2031_s22 + $0xb0] sm:$0xff] %v935_v37  ;;  %970 = vst [vmem:[#allocation15 + $0x30] sm:$0xff] %v935_v37  ;;  %v912_v29 = vmax.f32 %v896_v43, 1e-24  ;;  %v911_v30 = vmax.f32 %v894_v22, 1e-24 }
 0x399   : > { %v1369_v31 = vpop.eup %1368  ;;  %v938_v50 = vmul.f32 %v1367_v24, %v2088_v2 }
 0x39a   : > { %v937_v51 = vmul.f32 %v1369_v31, %v2090_v4  ;;  %1378 = vrsqrt.f32 %v912_v29 }
 0x39b   : > { %1124 = vst [vmem:[%s2031_s22 + $0xc8] sm:$0xff] %v938_v50  ;;  %973 = vst [vmem:[#allocation15 + $0x48] sm:$0xff] %v938_v50  ;;  %1380 = vrsqrt.f32 %v911_v30 }
 0x39c   : > { %v1371_v3 = vpop.eup %1370  ;;  %1123 = vst [vmem:[%s2031_s22 + $0xc0] sm:$0xff] %v937_v51  ;;  %972 = vst [vmem:[#allocation15 + $0x40] sm:$0xff] %v937_v51 }
 0x39d   : > { %v1373_v32 = vpop.eup %1372  ;;  %v940_v35 = vmul.f32 %v1371_v3, %v2095_v10 }
 0x39e   : > { %v939_v36 = vmul.f32 %v1373_v32, %v2097_v11 }
 0x39f   : > { %1126 = vst [vmem:[%s2031_s22 + $0xd8] sm:$0xff] %v940_v35  ;;  %975 = vst [vmem:[#allocation15 + $0x58] sm:$0xff] %v940_v35 }
 0x3a0   : > { %v1375_v2 = vpop.eup %1374  ;;  %1125 = vst [vmem:[%s2031_s22 + $0xd0] sm:$0xff] %v939_v36  ;;  %974 = vst [vmem:[#allocation15 + $0x50] sm:$0xff] %v939_v36 }
 0x3a1   : > { %v1377_v4 = vpop.eup %1376  ;;  %v942_v38 = vmul.f32 %v1375_v2, %v2109_v21 }
 0x3a2   : > { %v941_v39 = vmul.f32 %v1377_v4, %v2113_v23 }
 0x3a3   : > { %1128 = vst [vmem:[%s2031_s22 + $0xe8] sm:$0xff] %v942_v38  ;;  %977 = vst [vmem:[#allocation15 + $0x68] sm:$0xff] %v942_v38 }
 0x3a4   : > { %v1379_v40 = vpop.eup %1378  ;;  %1127 = vst [vmem:[%s2031_s22 + $0xe0] sm:$0xff] %v941_v39  ;;  %976 = vst [vmem:[#allocation15 + $0x60] sm:$0xff] %v941_v39 }
 0x3a5   : > { %v1381_v10 = vpop.eup %1380  ;;  %v944_v11 = vmul.f32 %v1379_v40, %v2121_v33 }
 0x3a6   : > { %v943_v41 = vmul.f32 %v1381_v10, %v2123_v34 }
 0x3a7   : > { %1130 = vst [vmem:[%s2031_s22 + $0xf8] sm:$0xff] %v944_v11  ;;  %979 = vst [vmem:[#allocation15 + $0x78] sm:$0xff] %v944_v11 }
 0x3a8   : > { %1129 = vst [vmem:[%s2031_s22 + $0xf0] sm:$0xff] %v943_v41  ;;  %978 = vst [vmem:[#allocation15 + $0x70] sm:$0xff] %v943_v41 }
 0x3a9 PF: > { %p1263_p7 = scmp.eq.s32.totalorder %s1793_s11, 8  ;;  %s1640_s21 = smov [#allocation15]  }
 0x3aa   : > { %s986_s28 = sshll.u32 %s1640_s21, 4  ;;  %s987_s28 = int_to_ptr.vmem [resolvable:$true] %s986_s28 }
 0x3ab   : > { %s1528_s1 = scalar_lea.vmem %s987_s28, 2048  ;;  %p1535_p6 = scmp.lt.s32.totalorder %s987_s28, %s987_s28 }
 0x3ac   : > { %p1529_p12 = scmp.ne.s32.totalorder %s987_s28, %s1528_s1  ;;  %p1536_p0 = scmp.lt.s32.totalorder %s1528_s1, %s1528_s1 }
 0x3ae   : > { %p1530_p10 = pnand %p1529_p12, %p1263_p7  ;;  %p1537_p11 = por %p1536_p0, %p1535_p6 }
 0x3b0   : > { %p1531_p3 = pneg %p1530_p10 }
 0x3b2   : > { %p1538_p13 = pnand %p1537_p11, %p1531_p3 }
 0x3b4   : > { %1541 = shalt.err (!%p1538_p13)
}
 0x3b5   : > { %s1542_s24 = scalar_lea.hbm %s2211_s9, 2048 }
 0x3b6   : > { %p1543_p9 = scmp.ne.s32.totalorder %s2211_s9, %s1542_s24  ;;  %p1548_p4 = scmp.lt.u32.totalorder %s1542_s24, %s2211_s9 }
 0x3b8   : > { %p1544_p5 = pnand %p1543_p9, %p1263_p7 }
 0x3ba   : > { %p1545_p8 = pneg %p1544_p5 }
 0x3bc   : > { %p1550_p2 = pnand %p1548_p4, %p1545_p8 }
 0x3be   : > { %1553 = shalt.err (!%p1550_p2)
}
 0x3bf   : > { %s1641_s0 = smov 128   ;;  %s1642_s19 = smov 8  }
 0x3c0   : > { %1244 = dma.vmem_to_hbm [thread:$0]  (%p1263_p7), %s987_s28, 2048, %s2211_s9, [#allocation11], %s1641_s0, %s1641_s0, %s1642_s19  }
 0x3c1   : > { %1597 = dma.done.wait (%p1263_p7), [#allocation11], 2048  }
 0x3c2   : > { %1599 = vsyncadd (%p1263_p7), [#allocation11], 4294965248 }
 0x3c3 PF: > { %p41_p1 = scmp.ge.s32.totalorder %s1753_s20, 11   ;;  %s2249_s14 = smov %s1606_s4 }
 0x3c4   : > { %s2250_s4 = smov %s1610_s15  ;;  %s2251_s15 = smov %s1902_s13 }
 0x3c5   : > { %s2252_s16 = smov %s1618_s17  ;;  %s2253_s17 = smov %s1622_s18 }
 0x3c6   : > { %s2254_s18 = smov %s1781_s30  ;;  %s2255_s19 = smov %s1753_s20 }
 0x3c7   :  { %43 = sbr.rel (!%p41_p1) target bundleno = 60 (0x3c), region = 108 }
 0x3ce   :  { %1002 = vsyncpa [#allocation10], 1 }
 0x3cf   :  { %1004 = vsyncpa [#allocation10 + $0x1], 1 }
 0x3d0   :  { %1005 = vsyncpa [#allocation13], 1 }
 0x3d1   :  { %1006 = vsyncpa [#allocation11], 1 }
 0x3d2   :  { %1008 = vsyncpa [#allocation11 + $0x1], 1 }

</bundles_post_ra>
